<compile_context>
chip_gen: v7x
topology: tpu7x:2x2x1
jax: 0.10.0
libtpu: 0.0.40
codegen_flags: <defaults>
</compile_context>

<pallas_src>
import functools
import math

import jax
import jax.numpy as jnp
from jax.experimental import pallas as pl
from jax.experimental.pallas import tpu as pltpu

# Squeezed block-dim sentinel (None is the long-standing equivalent spelling).
_SQ = pl.Squeezed() if hasattr(pl, "Squeezed") else None


# ------------------------------ fused Pallas kernel ------------------------------

def _fused_block_kernel(*refs, num_heads, head_dim, has_conv):
    if has_conv:
        (x_ref, conv_w_ref, conv_b_ref, lin_w_ref, lin_b_ref,
         wqkv_ref, bqkv_ref, wo_ref, bo_ref, wfc_ref, o_ref) = refs
    else:
        (x_ref, lin_w_ref, lin_b_ref,
         wqkv_ref, bqkv_ref, wo_ref, bo_ref, wfc_ref, o_ref) = refs
        conv_w_ref = conv_b_ref = None

    c2 = num_heads * head_dim
    layer = pl.program_id(1)

    # ---- stem (layer 0 of this batch tile): 1x1 conv + folded BN + SiLU,
    #      then p + positional_linear(p).  The resident output block doubles
    #      as the cross-layer f32 state carrier. ----
    @pl.when(layer == 0)
    def _stem():
        t = x_ref[...]                                           # (S, c1) f32
        if has_conv:
            t = (jnp.dot(t.astype(jnp.bfloat16), conv_w_ref[...],
                         preferred_element_type=jnp.float32)
                 + conv_b_ref[...])
            t = t * jax.nn.sigmoid(t)                            # SiLU, f32
        o_ref[...] = (t
                      + jnp.dot(t.astype(jnp.bfloat16), lin_w_ref[...],
                                preferred_element_type=jnp.float32)
                      + lin_b_ref[...])

    p = o_ref[...]                                               # (S, c2) f32 state
    p_bf = p.astype(jnp.bfloat16)

    # ---- fused QKV projection (q/k/v Linear pre-composed with MHA in-proj;
    #      1/sqrt(hd) folded into Q columns, K bias zeroed host-side). ----
    qkv = (jnp.dot(p_bf, wqkv_ref[...], preferred_element_type=jnp.float32)
           + bqkv_ref[...])                                      # (S, 3*c2) f32

    # ---- multi-head attention; head outputs accumulated through per-head
    #      row-slices of the out-projection (no lane-axis concat ever). ----
    attn = p + bo_ref[...]                                       # residual + out-proj bias
    for h in range(num_heads):
        lo = h * head_dim
        q = qkv[:, lo:lo + head_dim].astype(jnp.bfloat16)        # scale pre-folded
        k = qkv[:, c2 + lo:c2 + lo + head_dim].astype(jnp.bfloat16)
        v = qkv[:, 2 * c2 + lo:2 * c2 + lo + head_dim].astype(jnp.bfloat16)
        s = jax.lax.dot_general(q, k, (((1,), (1,)), ((), ())),
                                preferred_element_type=jnp.float32)   # (S, S)
        s = s - jnp.max(s, axis=-1, keepdims=True)
        e = jnp.exp(s)
        prob = e * pl.reciprocal(jnp.sum(e, axis=-1, keepdims=True), approx=True)
        o_h = jnp.dot(prob.astype(jnp.bfloat16), v,
                      preferred_element_type=jnp.float32)             # (S, hd)
        attn = attn + jnp.dot(o_h.astype(jnp.bfloat16),
                              wo_ref[lo:lo + head_dim, :],
                              preferred_element_type=jnp.float32)

    # ---- fused fc2(fc1(.)) + residual 2; write back the carried state ----
    o_ref[...] = (jnp.dot(attn.astype(jnp.bfloat16), wfc_ref[...],
                          preferred_element_type=jnp.float32) + attn)


def transformer_block_forward_pallas(x, fused):
    """x: (b, c1, w, h) NCHW float32 -> (b, c2, w, h) float32."""
    b, c1, w, h = x.shape
    c2 = fused["c2"]
    H = fused["num_heads"]
    hd = c2 // H
    L = fused["num_layers"]
    S = w * h
    N = b * S
    has_conv = fused["has_conv"]

    # Batch-major token slab (row = bi*S + s); attention mixes rows only
    # within one batch element, which is exactly one grid tile below.
    xt = x.reshape(b, c1, S).transpose(0, 2, 1).reshape(N, c1)

    kernel = functools.partial(_fused_block_kernel, num_heads=H, head_dim=hd,
                               has_conv=has_conv)

    const2 = lambda i, l: (0, 0)
    per_layer3 = lambda i, l: (l, 0, 0)

    in_specs = [pl.BlockSpec((S, c1), lambda i, l: (i, 0))]      # tokens (per batch tile)
    operands = [xt]
    if has_conv:
        in_specs += [pl.BlockSpec((c1, c2), const2),             # folded conv W (bf16)
                     pl.BlockSpec((1, c2), const2)]              # folded conv b (f32)
        operands += [fused["conv_w"], fused["conv_b"]]
    in_specs += [
        pl.BlockSpec((c2, c2), const2),                          # positional linear W (bf16)
        pl.BlockSpec((1, c2), const2),                           # positional linear b (f32)
        pl.BlockSpec((_SQ, c2, 3 * c2), per_layer3),             # fused QKV W (bf16)
        pl.BlockSpec((_SQ, 1, 3 * c2), per_layer3),              # fused QKV b (f32)
        pl.BlockSpec((_SQ, c2, c2), per_layer3),                 # out-proj W (bf16)
        pl.BlockSpec((_SQ, 1, c2), per_layer3),                  # out-proj b (f32)
        pl.BlockSpec((_SQ, c2, c2), per_layer3),                 # fused fc W (bf16)
    ]
    operands += [fused["lin_w"], fused["lin_b"], fused["wqkv"], fused["bqkv"],
                 fused["wo"], fused["bo"], fused["wfc"]]

    out = pl.pallas_call(
        kernel,
        out_shape=jax.ShapeDtypeStruct((N, c2), jnp.float32),
        grid=(b, L),
        in_specs=in_specs,
        out_specs=pl.BlockSpec((S, c2), lambda i, l: (i, 0)),
        compiler_params=pltpu.CompilerParams(
            dimension_semantics=("parallel", "arbitrary")),
    )(*operands)

    # rows (bi*S + s) -> PyTorch's permute(1, 2, 0).reshape(b, c2, w, h)
    return out.reshape(b, S, c2).transpose(0, 2, 1).reshape(b, c2, w, h)


# ------------------------------ parameters ----------------------------------

def init_params(key, c1, c2, num_heads, num_layers):
    """Raw PyTorch-equivalent parameters (weights pre-transposed to (in, out))."""
    keys = jax.random.split(key, 4 + num_layers)

    def normal(k, shape, scale=0.05):
        return (scale * jax.random.normal(k, shape)).astype(jnp.float32)

    params = {"c2": c2, "num_heads": num_heads}

    if c1 != c2:
        # Conv(c1, c2, k=1): 1x1 conv (no bias) + BatchNorm2d(eval) + SiLU; BN folded.
        kc, kg, kb, km, kv = jax.random.split(keys[0], 5)
        w_conv = normal(kc, (c2, c1), 0.2)
        gamma = 1.0 + normal(kg, (c2,), 0.1)
        beta = normal(kb, (c2,), 0.1)
        run_mean = normal(km, (c2,), 0.1)
        run_var = 1.0 + 0.1 * jax.random.uniform(kv, (c2,), dtype=jnp.float32)
        eps = 1e-5
        bn_scale = gamma / jnp.sqrt(run_var + eps)
        params["conv"] = ((w_conv * bn_scale[:, None]).T,        # (c1, c2)
                          beta - run_mean * bn_scale)            # (c2,)
    else:
        params["conv"] = None

    params["lin_w"] = normal(keys[1], (c2, c2)).T
    params["lin_b"] = normal(keys[2], (c2,))

    layers = []
    for li in range(num_layers):
        ks = jax.random.split(keys[3 + li], 9)
        in_proj_w = normal(ks[0], (3 * c2, c2))
        in_proj_b = normal(ks[1], (3 * c2,))
        layers.append(dict(
            wq=normal(ks[2], (c2, c2)).T,
            wk=normal(ks[3], (c2, c2)).T,
            wv=normal(ks[4], (c2, c2)).T,
            wiq=in_proj_w[:c2].T,          biq=in_proj_b[:c2],
            wik=in_proj_w[c2:2 * c2].T,    bik=in_proj_b[c2:2 * c2],
            wiv=in_proj_w[2 * c2:].T,      biv=in_proj_b[2 * c2:],
            wo=normal(ks[5], (c2, c2)).T,  bo=normal(ks[6], (c2,)),
            wfc1=normal(ks[7], (c2, c2)).T,
            wfc2=normal(ks[8], (c2, c2)).T,
        ))
    params["layers"] = layers
    return params


def fuse_params(params):
    """Precompose consecutive linears, fold softmax scale into Q, drop K bias,
    cast matmul weights to bf16, stack per-layer."""
    c2 = params["c2"]
    H = params["num_heads"]
    hd = c2 // H
    inv = 1.0 / math.sqrt(hd)
    fused = {"c2": c2, "num_heads": H, "num_layers": len(params["layers"])}

    if params["conv"] is not None:
        w_eff, b_eff = params["conv"]
        fused["has_conv"] = True
        fused["conv_w"] = w_eff.astype(jnp.bfloat16)             # (c1, c2)
        fused["conv_b"] = b_eff.reshape(1, c2)                   # f32
    else:
        fused["has_conv"] = False

    fused["lin_w"] = params["lin_w"].astype(jnp.bfloat16)
    fused["lin_b"] = params["lin_b"].reshape(1, c2)

    wqkv, bqkv, wo, bo, wfc = [], [], [], [], []
    for lp in params["layers"]:
        wQ = (lp["wq"] @ lp["wiq"]) * inv          # q-linear ∘ in-proj, scale folded
        wK = lp["wk"] @ lp["wik"]
        wV = lp["wv"] @ lp["wiv"]
        wqkv.append(jnp.concatenate([wQ, wK, wV], axis=1))                 # (c2, 3c2)
        bqkv.append(jnp.concatenate([lp["biq"] * inv,
                                     jnp.zeros_like(lp["bik"]),            # K bias cancels in softmax
                                     lp["biv"]]).reshape(1, 3 * c2))
        wo.append(lp["wo"])
        bo.append(lp["bo"].reshape(1, c2))
        wfc.append(lp["wfc1"] @ lp["wfc2"])                                # fc2 ∘ fc1
    fused["wqkv"] = jnp.stack(wqkv).astype(jnp.bfloat16)   # (L, c2, 3c2)
    fused["bqkv"] = jnp.stack(bqkv)                        # (L, 1, 3c2) f32
    fused["wo"] = jnp.stack(wo).astype(jnp.bfloat16)       # (L, c2, c2)
    fused["bo"] = jnp.stack(bo)                            # (L, 1, c2)  f32
    fused["wfc"] = jnp.stack(wfc).astype(jnp.bfloat16)     # (L, c2, c2)
    return fused


# --------------------------- pure-jnp reference (unfused, f32) --------------------------

def reference_forward(x, params):
    b, c1, w, h = x.shape
    c2 = params["c2"]
    H = params["num_heads"]
    hd = c2 // H
    S = w * h

    if params["conv"] is not None:
        w_eff, b_eff = params["conv"]
        xt = x.reshape(b, c1, S).transpose(0, 2, 1) @ w_eff + b_eff
        xt = xt * jax.nn.sigmoid(xt)
        xcs = xt.transpose(0, 2, 1)                     # (b, c2, S)
    else:
        xcs = x.reshape(b, c2, S)

    p = xcs.transpose(2, 0, 1)                          # (S, b, c2)
    p = p + (p @ params["lin_w"] + params["lin_b"])

    for lp in params["layers"]:
        Q = (p @ lp["wq"]) @ lp["wiq"] + lp["biq"]
        K = (p @ lp["wk"]) @ lp["wik"] + lp["bik"]
        V = (p @ lp["wv"]) @ lp["wiv"] + lp["biv"]

        def to_heads(t):
            return t.reshape(S, b, H, hd).transpose(1, 2, 0, 3)   # (b, H, S, hd)

        q4, k4, v4 = to_heads(Q), to_heads(K), to_heads(V)
        s = jnp.einsum("bhqd,bhkd->bhqk", q4, k4) / math.sqrt(hd)
        a = jax.nn.softmax(s, axis=-1)
        o = jnp.einsum("bhqk,bhkd->bhqd", a, v4)
        attn = o.transpose(2, 0, 1, 3).reshape(S, b, c2)
        attn = attn @ lp["wo"] + lp["bo"]
        p = attn + p
        p = (p @ lp["wfc1"]) @ lp["wfc2"] + p

    return p.transpose(1, 2, 0).reshape(b, c2, w, h)


# ----------------------------------- main ------------------------------------

if __name__ == "__main__":
    key = jax.random.PRNGKey(0)
    kx, kp = jax.random.split(key)

    # Small demo sizes, lane-friendly: c2 = 128 (vreg lane width), S = 64.
    B, C1, W, H = 2, 4, 8, 8               # input NCHW
    C2, NUM_HEADS, NUM_LAYERS = 128, 4, 2

    x = jax.random.normal(kx, (B, C1, W, H), dtype=jnp.float32)
    params = init_params(kp, C1, C2, NUM_HEADS, NUM_LAYERS)
    fused = fuse_params(params)

    out = transformer_block_forward_pallas(x, fused)
    out = jax.block_until_ready(out)

    ref = reference_forward(x, params)
    assert out.shape == (B, C2, W, H)
    max_err = float(jnp.max(jnp.abs(out - ref)))
    assert bool(jnp.allclose(out, ref, atol=2e-2, rtol=2e-2)), max_err

    print("KERNEL_OK")
</pallas_src>

<mosaic_0001>
module attributes {stable_mosaic.version = 11 : i64} {
  func.func @_fused_block_kernel(%arg0: i32, %arg1: i32, %arg2: memref<64x4xf32, #tpu.memory_space<vmem>>, %arg3: memref<4x128xbf16, #tpu.memory_space<vmem>>, %arg4: memref<1x128xf32, #tpu.memory_space<vmem>>, %arg5: memref<128x128xbf16, #tpu.memory_space<vmem>>, %arg6: memref<1x128xf32, #tpu.memory_space<vmem>>, %arg7: memref<1x128x384xbf16, #tpu.memory_space<vmem>>, %arg8: memref<1x1x384xf32, #tpu.memory_space<vmem>>, %arg9: memref<1x128x128xbf16, #tpu.memory_space<vmem>>, %arg10: memref<1x1x128xf32, #tpu.memory_space<vmem>>, %arg11: memref<1x128x128xbf16, #tpu.memory_space<vmem>>, %arg12: memref<64x128xf32, #tpu.memory_space<vmem>>) attributes {dimension_semantics = [#tpu.dimension_semantics<parallel>, #tpu.dimension_semantics<arbitrary>], iteration_bounds = array<i64: 2, 2>, scalar_prefetch = 0 : i64, scratch_operands = 0 : i64, tpu.core_type = #tpu.core_type<tc>, window_params = [{transform_indices = @transform_0, window_bounds = array<i64: 64, 4>}, {pipeline_mode = #tpu.pipeline_mode<synchronous>, transform_indices = @transform_1, window_bounds = array<i64: 4, 128>}, {pipeline_mode = #tpu.pipeline_mode<synchronous>, transform_indices = @transform_2, window_bounds = array<i64: 1, 128>}, {pipeline_mode = #tpu.pipeline_mode<synchronous>, transform_indices = @transform_3, window_bounds = array<i64: 128, 128>}, {pipeline_mode = #tpu.pipeline_mode<synchronous>, transform_indices = @transform_4, window_bounds = array<i64: 1, 128>}, {transform_indices = @transform_5, window_bounds = array<i64: 1, 128, 384>}, {transform_indices = @transform_6, window_bounds = array<i64: 1, 1, 384>}, {transform_indices = @transform_7, window_bounds = array<i64: 1, 128, 128>}, {transform_indices = @transform_8, window_bounds = array<i64: 1, 1, 128>}, {transform_indices = @transform_9, window_bounds = array<i64: 1, 128, 128>}, {transform_indices = @transform_10, window_bounds = array<i64: 64, 128>}]} {
    %c0_i32 = arith.constant 0 : i32
    %0 = arith.cmpi eq, %arg1, %c0_i32 : i32
    %1 = arith.extui %0 : i1 to i32
    %c0_i32_0 = arith.constant 0 : i32
    %2 = arith.cmpi ne, %1, %c0_i32_0 : i32
    scf.if %2 {
      %c0_46 = arith.constant 0 : index
      %c0_47 = arith.constant 0 : index
      %118 = vector.load %arg2[%c0_46, %c0_47] : memref<64x4xf32, #tpu.memory_space<vmem>>, vector<64x4xf32>
      %119 = arith.truncf %118 : vector<64x4xf32> to vector<64x4xbf16>
      %c0_48 = arith.constant 0 : index
      %c0_49 = arith.constant 0 : index
      %120 = vector.load %arg3[%c0_48, %c0_49] : memref<4x128xbf16, #tpu.memory_space<vmem>>, vector<4x128xbf16>
      %cst_50 = arith.constant dense<0.000000e+00> : vector<64x128xf32>
      %121 = tpu.matmul %119, %120, %cst_50 {dimension_numbers = #tpu.dot_dimension_numbers<[1], [0], [0], [1], [0, 0, 1, 1], [], []>} : vector<64x4xbf16>, vector<4x128xbf16>, vector<64x128xf32> -> vector<64x128xf32>
      %c0_51 = arith.constant 0 : index
      %c0_52 = arith.constant 0 : index
      %122 = vector.load %arg4[%c0_51, %c0_52] : memref<1x128xf32, #tpu.memory_space<vmem>>, vector<1x128xf32>
      %123 = vector.broadcast %122 : vector<1x128xf32> to vector<64x128xf32>
      %124 = arith.addf %121, %123 : vector<64x128xf32>
      %125 = arith.negf %124 : vector<64x128xf32>
      %126 = math.exp %125 : vector<64x128xf32>
      %cst_53 = arith.constant 1.000000e+00 : f32
      %127 = vector.broadcast %cst_53 : f32 to vector<64x128xf32>
      %128 = arith.addf %127, %126 : vector<64x128xf32>
      %129 = arith.divf %127, %128 : vector<64x128xf32>
      %130 = arith.mulf %124, %129 : vector<64x128xf32>
      %131 = arith.truncf %130 : vector<64x128xf32> to vector<64x128xbf16>
      %c0_54 = arith.constant 0 : index
      %c0_55 = arith.constant 0 : index
      %132 = vector.load %arg5[%c0_54, %c0_55] : memref<128x128xbf16, #tpu.memory_space<vmem>>, vector<128x128xbf16>
      %cst_56 = arith.constant dense<0.000000e+00> : vector<64x128xf32>
      %133 = tpu.matmul %131, %132, %cst_56 {dimension_numbers = #tpu.dot_dimension_numbers<[1], [0], [0], [1], [0, 0, 1, 1], [], []>} : vector<64x128xbf16>, vector<128x128xbf16>, vector<64x128xf32> -> vector<64x128xf32>
      %134 = arith.addf %130, %133 : vector<64x128xf32>
      %c0_57 = arith.constant 0 : index
      %c0_58 = arith.constant 0 : index
      %135 = vector.load %arg6[%c0_57, %c0_58] : memref<1x128xf32, #tpu.memory_space<vmem>>, vector<1x128xf32>
      %136 = vector.broadcast %135 : vector<1x128xf32> to vector<64x128xf32>
      %137 = arith.addf %134, %136 : vector<64x128xf32>
      %c0_59 = arith.constant 0 : index
      %c0_60 = arith.constant 0 : index
      %138 = vector.load %arg12[%c0_59, %c0_60] : memref<64x128xf32, #tpu.memory_space<vmem>>, vector<64x128xf32>
      tpu.vector_store %arg12[%c0_59, %c0_60], %137 {strides = array<i32>} : memref<64x128xf32, #tpu.memory_space<vmem>>, vector<64x128xf32>,
    } else {
    }
    %c0 = arith.constant 0 : index
    %c0_1 = arith.constant 0 : index
    %3 = vector.load %arg12[%c0, %c0_1] : memref<64x128xf32, #tpu.memory_space<vmem>>, vector<64x128xf32>
    %4 = arith.truncf %3 : vector<64x128xf32> to vector<64x128xbf16>
    %c0_2 = arith.constant 0 : index
    %c0_3 = arith.constant 0 : index
    %c0_4 = arith.constant 0 : index
    %5 = vector.load %arg7[%c0_2, %c0_3, %c0_4] : memref<1x128x384xbf16, #tpu.memory_space<vmem>>, vector<1x128x384xbf16>
    %6 = vector.shape_cast %5 : vector<1x128x384xbf16> to vector<128x384xbf16>
    %cst = arith.constant dense<0.000000e+00> : vector<64x384xf32>
    %7 = tpu.matmul %4, %6, %cst {dimension_numbers = #tpu.dot_dimension_numbers<[1], [0], [0], [1], [0, 0, 1, 1], [], []>} : vector<64x128xbf16>, vector<128x384xbf16>, vector<64x384xf32> -> vector<64x384xf32>
    %c0_5 = arith.constant 0 : index
    %c0_6 = arith.constant 0 : index
    %c0_7 = arith.constant 0 : index
    %8 = vector.load %arg8[%c0_5, %c0_6, %c0_7] : memref<1x1x384xf32, #tpu.memory_space<vmem>>, vector<1x1x384xf32>
    %9 = vector.shape_cast %8 : vector<1x1x384xf32> to vector<1x384xf32>
    %10 = vector.broadcast %9 : vector<1x384xf32> to vector<64x384xf32>
    %11 = arith.addf %7, %10 : vector<64x384xf32>
    %c0_8 = arith.constant 0 : index
    %c0_9 = arith.constant 0 : index
    %c0_10 = arith.constant 0 : index
    %12 = vector.load %arg10[%c0_8, %c0_9, %c0_10] : memref<1x1x128xf32, #tpu.memory_space<vmem>>, vector<1x1x128xf32>
    %13 = vector.shape_cast %12 : vector<1x1x128xf32> to vector<1x128xf32>
    %14 = vector.broadcast %13 : vector<1x128xf32> to vector<64x128xf32>
    %15 = arith.addf %3, %14 : vector<64x128xf32>
    %16 = vector.extract_strided_slice %11 {offsets = [0, 0], sizes = [64, 32], strides = [1, 1]} : vector<64x384xf32> to vector<64x32xf32>
    %17 = arith.truncf %16 : vector<64x32xf32> to vector<64x32xbf16>
    %18 = vector.extract_strided_slice %11 {offsets = [0, 128], sizes = [64, 32], strides = [1, 1]} : vector<64x384xf32> to vector<64x32xf32>
    %19 = arith.truncf %18 : vector<64x32xf32> to vector<64x32xbf16>
    %20 = vector.extract_strided_slice %11 {offsets = [0, 256], sizes = [64, 32], strides = [1, 1]} : vector<64x384xf32> to vector<64x32xf32>
    %21 = arith.truncf %20 : vector<64x32xf32> to vector<64x32xbf16>
    %cst_11 = arith.constant dense<0.000000e+00> : vector<64x64xf32>
    %22 = tpu.matmul %17, %19, %cst_11 {dimension_numbers = #tpu.dot_dimension_numbers<[1], [1], [0], [0], [0, 0, 1, 0], [], []>} : vector<64x32xbf16>, vector<64x32xbf16>, vector<64x64xf32> -> vector<64x64xf32>
    %cst_12 = arith.constant dense<0xFF800000> : vector<64xf32>
    %23 = vector.multi_reduction <maximumf>, %22, %cst_12 [1] : vector<64x64xf32> to vector<64xf32>
    %24 = vector.shape_cast %23 : vector<64xf32> to vector<64x1xf32>
    %25 = vector.broadcast %24 : vector<64x1xf32> to vector<64x64xf32>
    %26 = arith.subf %22, %25 : vector<64x64xf32>
    %27 = math.exp %26 : vector<64x64xf32>
    %cst_13 = arith.constant dense<0.000000e+00> : vector<64xf32>
    %28 = vector.multi_reduction <add>, %27, %cst_13 [1] : vector<64x64xf32> to vector<64xf32>
    %29 = vector.shape_cast %28 : vector<64xf32> to vector<64x1xf32>
    %30 = tpu.reciprocal %29 {approx = true} : vector<64x1xf32> -> vector<64x1xf32>
    %31 = vector.broadcast %30 : vector<64x1xf32> to vector<64x64xf32>
    %32 = arith.mulf %27, %31 : vector<64x64xf32>
    %33 = arith.truncf %32 : vector<64x64xf32> to vector<64x64xbf16>
    %cst_14 = arith.constant dense<0.000000e+00> : vector<64x32xf32>
    %34 = tpu.matmul %33, %21, %cst_14 {dimension_numbers = #tpu.dot_dimension_numbers<[1], [0], [0], [1], [0, 0, 1, 1], [], []>} : vector<64x64xbf16>, vector<64x32xbf16>, vector<64x32xf32> -> vector<64x32xf32>
    %35 = arith.truncf %34 : vector<64x32xf32> to vector<64x32xbf16>
    %c0_15 = arith.constant 0 : index
    %c0_16 = arith.constant 0 : index
    %c0_17 = arith.constant 0 : index
    %36 = vector.load %arg9[%c0_15, %c0_16, %c0_17] : memref<1x128x128xbf16, #tpu.memory_space<vmem>>, vector<1x32x128xbf16>
    %37 = vector.shape_cast %36 : vector<1x32x128xbf16> to vector<32x128xbf16>
    %cst_18 = arith.constant dense<0.000000e+00> : vector<64x128xf32>
    %38 = tpu.matmul %35, %37, %cst_18 {dimension_numbers = #tpu.dot_dimension_numbers<[1], [0], [0], [1], [0, 0, 1, 1], [], []>} : vector<64x32xbf16>, vector<32x128xbf16>, vector<64x128xf32> -> vector<64x128xf32>
    %39 = arith.addf %15, %38 : vector<64x128xf32>
    %40 = vector.extract_strided_slice %11 {offsets = [0, 32], sizes = [64, 32], strides = [1, 1]} : vector<64x384xf32> to vector<64x32xf32>
    %41 = arith.truncf %40 : vector<64x32xf32> to vector<64x32xbf16>
    %42 = vector.extract_strided_slice %11 {offsets = [0, 160], sizes = [64, 32], strides = [1, 1]} : vector<64x384xf32> to vector<64x32xf32>
    %43 = arith.truncf %42 : vector<64x32xf32> to vector<64x32xbf16>
    %44 = vector.extract_strided_slice %11 {offsets = [0, 288], sizes = [64, 32], strides = [1, 1]} : vector<64x384xf32> to vector<64x32xf32>
    %45 = arith.truncf %44 : vector<64x32xf32> to vector<64x32xbf16>
    %cst_19 = arith.constant dense<0.000000e+00> : vector<64x64xf32>
    %46 = tpu.matmul %41, %43, %cst_19 {dimension_numbers = #tpu.dot_dimension_numbers<[1], [1], [0], [0], [0, 0, 1, 0], [], []>} : vector<64x32xbf16>, vector<64x32xbf16>, vector<64x64xf32> -> vector<64x64xf32>
    %cst_20 = arith.constant dense<0xFF800000> : vector<64xf32>
    %47 = vector.multi_reduction <maximumf>, %46, %cst_20 [1] : vector<64x64xf32> to vector<64xf32>
    %48 = vector.shape_cast %47 : vector<64xf32> to vector<64x1xf32>
    %49 = vector.broadcast %48 : vector<64x1xf32> to vector<64x64xf32>
    %50 = arith.subf %46, %49 : vector<64x64xf32>
    %51 = math.exp %50 : vector<64x64xf32>
    %cst_21 = arith.constant dense<0.000000e+00> : vector<64xf32>
    %52 = vector.multi_reduction <add>, %51, %cst_21 [1] : vector<64x64xf32> to vector<64xf32>
    %53 = vector.shape_cast %52 : vector<64xf32> to vector<64x1xf32>
    %54 = tpu.reciprocal %53 {approx = true} : vector<64x1xf32> -> vector<64x1xf32>
    %55 = vector.broadcast %54 : vector<64x1xf32> to vector<64x64xf32>
    %56 = arith.mulf %51, %55 : vector<64x64xf32>
    %57 = arith.truncf %56 : vector<64x64xf32> to vector<64x64xbf16>
    %cst_22 = arith.constant dense<0.000000e+00> : vector<64x32xf32>
    %58 = tpu.matmul %57, %45, %cst_22 {dimension_numbers = #tpu.dot_dimension_numbers<[1], [0], [0], [1], [0, 0, 1, 1], [], []>} : vector<64x64xbf16>, vector<64x32xbf16>, vector<64x32xf32> -> vector<64x32xf32>
    %59 = arith.truncf %58 : vector<64x32xf32> to vector<64x32xbf16>
    %c0_23 = arith.constant 0 : index
    %c32 = arith.constant 32 : index
    %c0_24 = arith.constant 0 : index
    %60 = vector.load %arg9[%c0_23, %c32, %c0_24] : memref<1x128x128xbf16, #tpu.memory_space<vmem>>, vector<1x32x128xbf16>
    %61 = vector.shape_cast %60 : vector<1x32x128xbf16> to vector<32x128xbf16>
    %cst_25 = arith.constant dense<0.000000e+00> : vector<64x128xf32>
    %62 = tpu.matmul %59, %61, %cst_25 {dimension_numbers = #tpu.dot_dimension_numbers<[1], [0], [0], [1], [0, 0, 1, 1], [], []>} : vector<64x32xbf16>, vector<32x128xbf16>, vector<64x128xf32> -> vector<64x128xf32>
    %63 = arith.addf %39, %62 : vector<64x128xf32>
    %64 = vector.extract_strided_slice %11 {offsets = [0, 64], sizes = [64, 32], strides = [1, 1]} : vector<64x384xf32> to vector<64x32xf32>
    %65 = arith.truncf %64 : vector<64x32xf32> to vector<64x32xbf16>
    %66 = vector.extract_strided_slice %11 {offsets = [0, 192], sizes = [64, 32], strides = [1, 1]} : vector<64x384xf32> to vector<64x32xf32>
    %67 = arith.truncf %66 : vector<64x32xf32> to vector<64x32xbf16>
    %68 = vector.extract_strided_slice %11 {offsets = [0, 320], sizes = [64, 32], strides = [1, 1]} : vector<64x384xf32> to vector<64x32xf32>
    %69 = arith.truncf %68 : vector<64x32xf32> to vector<64x32xbf16>
    %cst_26 = arith.constant dense<0.000000e+00> : vector<64x64xf32>
    %70 = tpu.matmul %65, %67, %cst_26 {dimension_numbers = #tpu.dot_dimension_numbers<[1], [1], [0], [0], [0, 0, 1, 0], [], []>} : vector<64x32xbf16>, vector<64x32xbf16>, vector<64x64xf32> -> vector<64x64xf32>
    %cst_27 = arith.constant dense<0xFF800000> : vector<64xf32>
    %71 = vector.multi_reduction <maximumf>, %70, %cst_27 [1] : vector<64x64xf32> to vector<64xf32>
    %72 = vector.shape_cast %71 : vector<64xf32> to vector<64x1xf32>
    %73 = vector.broadcast %72 : vector<64x1xf32> to vector<64x64xf32>
    %74 = arith.subf %70, %73 : vector<64x64xf32>
    %75 = math.exp %74 : vector<64x64xf32>
    %cst_28 = arith.constant dense<0.000000e+00> : vector<64xf32>
    %76 = vector.multi_reduction <add>, %75, %cst_28 [1] : vector<64x64xf32> to vector<64xf32>
    %77 = vector.shape_cast %76 : vector<64xf32> to vector<64x1xf32>
    %78 = tpu.reciprocal %77 {approx = true} : vector<64x1xf32> -> vector<64x1xf32>
    %79 = vector.broadcast %78 : vector<64x1xf32> to vector<64x64xf32>
    %80 = arith.mulf %75, %79 : vector<64x64xf32>
    %81 = arith.truncf %80 : vector<64x64xf32> to vector<64x64xbf16>
    %cst_29 = arith.constant dense<0.000000e+00> : vector<64x32xf32>
    %82 = tpu.matmul %81, %69, %cst_29 {dimension_numbers = #tpu.dot_dimension_numbers<[1], [0], [0], [1], [0, 0, 1, 1], [], []>} : vector<64x64xbf16>, vector<64x32xbf16>, vector<64x32xf32> -> vector<64x32xf32>
    %83 = arith.truncf %82 : vector<64x32xf32> to vector<64x32xbf16>
    %c0_30 = arith.constant 0 : index
    %c64 = arith.constant 64 : index
    %c0_31 = arith.constant 0 : index
    %84 = vector.load %arg9[%c0_30, %c64, %c0_31] : memref<1x128x128xbf16, #tpu.memory_space<vmem>>, vector<1x32x128xbf16>
    %85 = vector.shape_cast %84 : vector<1x32x128xbf16> to vector<32x128xbf16>
    %cst_32 = arith.constant dense<0.000000e+00> : vector<64x128xf32>
    %86 = tpu.matmul %83, %85, %cst_32 {dimension_numbers = #tpu.dot_dimension_numbers<[1], [0], [0], [1], [0, 0, 1, 1], [], []>} : vector<64x32xbf16>, vector<32x128xbf16>, vector<64x128xf32> -> vector<64x128xf32>
    %87 = arith.addf %63, %86 : vector<64x128xf32>
    %88 = vector.extract_strided_slice %11 {offsets = [0, 96], sizes = [64, 32], strides = [1, 1]} : vector<64x384xf32> to vector<64x32xf32>
    %89 = arith.truncf %88 : vector<64x32xf32> to vector<64x32xbf16>
    %90 = vector.extract_strided_slice %11 {offsets = [0, 224], sizes = [64, 32], strides = [1, 1]} : vector<64x384xf32> to vector<64x32xf32>
    %91 = arith.truncf %90 : vector<64x32xf32> to vector<64x32xbf16>
    %92 = vector.extract_strided_slice %11 {offsets = [0, 352], sizes = [64, 32], strides = [1, 1]} : vector<64x384xf32> to vector<64x32xf32>
    %93 = arith.truncf %92 : vector<64x32xf32> to vector<64x32xbf16>
    %cst_33 = arith.constant dense<0.000000e+00> : vector<64x64xf32>
    %94 = tpu.matmul %89, %91, %cst_33 {dimension_numbers = #tpu.dot_dimension_numbers<[1], [1], [0], [0], [0, 0, 1, 0], [], []>} : vector<64x32xbf16>, vector<64x32xbf16>, vector<64x64xf32> -> vector<64x64xf32>
    %cst_34 = arith.constant dense<0xFF800000> : vector<64xf32>
    %95 = vector.multi_reduction <maximumf>, %94, %cst_34 [1] : vector<64x64xf32> to vector<64xf32>
    %96 = vector.shape_cast %95 : vector<64xf32> to vector<64x1xf32>
    %97 = vector.broadcast %96 : vector<64x1xf32> to vector<64x64xf32>
    %98 = arith.subf %94, %97 : vector<64x64xf32>
    %99 = math.exp %98 : vector<64x64xf32>
    %cst_35 = arith.constant dense<0.000000e+00> : vector<64xf32>
    %100 = vector.multi_reduction <add>, %99, %cst_35 [1] : vector<64x64xf32> to vector<64xf32>
    %101 = vector.shape_cast %100 : vector<64xf32> to vector<64x1xf32>
    %102 = tpu.reciprocal %101 {approx = true} : vector<64x1xf32> -> vector<64x1xf32>
    %103 = vector.broadcast %102 : vector<64x1xf32> to vector<64x64xf32>
    %104 = arith.mulf %99, %103 : vector<64x64xf32>
    %105 = arith.truncf %104 : vector<64x64xf32> to vector<64x64xbf16>
    %cst_36 = arith.constant dense<0.000000e+00> : vector<64x32xf32>
    %106 = tpu.matmul %105, %93, %cst_36 {dimension_numbers = #tpu.dot_dimension_numbers<[1], [0], [0], [1], [0, 0, 1, 1], [], []>} : vector<64x64xbf16>, vector<64x32xbf16>, vector<64x32xf32> -> vector<64x32xf32>
    %107 = arith.truncf %106 : vector<64x32xf32> to vector<64x32xbf16>
    %c0_37 = arith.constant 0 : index
    %c96 = arith.constant 96 : index
    %c0_38 = arith.constant 0 : index
    %108 = vector.load %arg9[%c0_37, %c96, %c0_38] : memref<1x128x128xbf16, #tpu.memory_space<vmem>>, vector<1x32x128xbf16>
    %109 = vector.shape_cast %108 : vector<1x32x128xbf16> to vector<32x128xbf16>
    %cst_39 = arith.constant dense<0.000000e+00> : vector<64x128xf32>
    %110 = tpu.matmul %107, %109, %cst_39 {dimension_numbers = #tpu.dot_dimension_numbers<[1], [0], [0], [1], [0, 0, 1, 1], [], []>} : vector<64x32xbf16>, vector<32x128xbf16>, vector<64x128xf32> -> vector<64x128xf32>
    %111 = arith.addf %87, %110 : vector<64x128xf32>
    %112 = arith.truncf %111 : vector<64x128xf32> to vector<64x128xbf16>
    %c0_40 = arith.constant 0 : index
    %c0_41 = arith.constant 0 : index
    %c0_42 = arith.constant 0 : index
    %113 = vector.load %arg11[%c0_40, %c0_41, %c0_42] : memref<1x128x128xbf16, #tpu.memory_space<vmem>>, vector<1x128x128xbf16>
    %114 = vector.shape_cast %113 : vector<1x128x128xbf16> to vector<128x128xbf16>
    %cst_43 = arith.constant dense<0.000000e+00> : vector<64x128xf32>
    %115 = tpu.matmul %112, %114, %cst_43 {dimension_numbers = #tpu.dot_dimension_numbers<[1], [0], [0], [1], [0, 0, 1, 1], [], []>} : vector<64x128xbf16>, vector<128x128xbf16>, vector<64x128xf32> -> vector<64x128xf32>
    %116 = arith.addf %115, %111 : vector<64x128xf32>
    %c0_44 = arith.constant 0 : index
    %c0_45 = arith.constant 0 : index
    %117 = vector.load %arg12[%c0_44, %c0_45] : memref<64x128xf32, #tpu.memory_space<vmem>>, vector<64x128xf32>
    tpu.vector_store %arg12[%c0_44, %c0_45], %116 {strides = array<i32>} : memref<64x128xf32, #tpu.memory_space<vmem>>, vector<64x128xf32>,
    return
  }
  func.func @transform_0(%arg0: i32, %arg1: i32) -> (i32, i32) {
    %c0_i32 = arith.constant 0 : i32
    %c0_i32_0 = arith.constant 0 : i32
    return %arg0, %c0_i32 : i32, i32
  }
  func.func @transform_1(%arg0: i32, %arg1: i32) -> (i32, i32) {
    %c0_i32 = arith.constant 0 : i32
    %c0_i32_0 = arith.constant 0 : i32
    %c0_i32_1 = arith.constant 0 : i32
    return %c0_i32, %c0_i32_0 : i32, i32
  }
  func.func @transform_2(%arg0: i32, %arg1: i32) -> (i32, i32) {
    %c0_i32 = arith.constant 0 : i32
    %c0_i32_0 = arith.constant 0 : i32
    %c0_i32_1 = arith.constant 0 : i32
    return %c0_i32, %c0_i32_0 : i32, i32
  }
  func.func @transform_3(%arg0: i32, %arg1: i32) -> (i32, i32) {
    %c0_i32 = arith.constant 0 : i32
    %c0_i32_0 = arith.constant 0 : i32
    %c0_i32_1 = arith.constant 0 : i32
    return %c0_i32, %c0_i32_0 : i32, i32
  }
  func.func @transform_4(%arg0: i32, %arg1: i32) -> (i32, i32) {
    %c0_i32 = arith.constant 0 : i32
    %c0_i32_0 = arith.constant 0 : i32
    %c0_i32_1 = arith.constant 0 : i32
    return %c0_i32, %c0_i32_0 : i32, i32
  }
  func.func @transform_5(%arg0: i32, %arg1: i32) -> (i32, i32, i32) {
    %c0_i32 = arith.constant 0 : i32
    %c0_i32_0 = arith.constant 0 : i32
    %c0_i32_1 = arith.constant 0 : i32
    return %arg1, %c0_i32, %c0_i32_0 : i32, i32, i32
  }
  func.func @transform_6(%arg0: i32, %arg1: i32) -> (i32, i32, i32) {
    %c0_i32 = arith.constant 0 : i32
    %c0_i32_0 = arith.constant 0 : i32
    %c0_i32_1 = arith.constant 0 : i32
    return %arg1, %c0_i32, %c0_i32_0 : i32, i32, i32
  }
  func.func @transform_7(%arg0: i32, %arg1: i32) -> (i32, i32, i32) {
    %c0_i32 = arith.constant 0 : i32
    %c0_i32_0 = arith.constant 0 : i32
    %c0_i32_1 = arith.constant 0 : i32
    return %arg1, %c0_i32, %c0_i32_0 : i32, i32, i32
  }
  func.func @transform_8(%arg0: i32, %arg1: i32) -> (i32, i32, i32) {
    %c0_i32 = arith.constant 0 : i32
    %c0_i32_0 = arith.constant 0 : i32
    %c0_i32_1 = arith.constant 0 : i32
    return %arg1, %c0_i32, %c0_i32_0 : i32, i32, i32
  }
  func.func @transform_9(%arg0: i32, %arg1: i32) -> (i32, i32, i32) {
    %c0_i32 = arith.constant 0 : i32
    %c0_i32_0 = arith.constant 0 : i32
    %c0_i32_1 = arith.constant 0 : i32
    return %arg1, %c0_i32, %c0_i32_0 : i32, i32, i32
  }
  func.func @transform_10(%arg0: i32, %arg1: i32) -> (i32, i32) {
    %c0_i32 = arith.constant 0 : i32
    %c0_i32_0 = arith.constant 0 : i32
    return %arg0, %c0_i32 : i32, i32
  }
}

</mosaic_0001>

<bundles_post_ra>
// kernel: tpu_custom_call.1
= control target key start
LH: loop header
LB: loop body
LE: loop exit
PB: predicated region body
PF: predicated region fallthrough
CT: control target
= control target key end

     0   :  { %s5243_s0 = inlined_call_operand.vmem [shape: f32[128,4], index: 0, kind: input, shape index: {}]   ;;  %s5244_s1 = inlined_call_operand.vmem [shape: bf16[4,128], index: 1, kind: input, shape index: {}]   ;;  %s5245_s2 = inlined_call_operand.vmem [shape: f32[1,128], index: 2, kind: input, shape index: {}]   ;;  %s5246_s3 = inlined_call_operand.hbm [shape: bf16[128,128], index: 3, kind: input, shape index: {}]   ;;  %s5247_s4 = inlined_call_operand.vmem [shape: f32[1,128], index: 4, kind: input, shape index: {}]   ;;  %s5248_s5 = inlined_call_operand.hbm [shape: bf16[2,128,384], index: 5, kind: input, shape index: {}]   ;;  %s5249_s6 = inlined_call_operand.vmem [shape: f32[2,1,384], index: 6, kind: input, shape index: {}]   ;;  %s5250_s7 = inlined_call_operand.vmem [shape: bf16[2,128,128], index: 7, kind: input, shape index: {}]   ;;  %s5251_s8 = inlined_call_operand.vmem [shape: f32[2,1,128], index: 8, kind: input, shape index: {}]   ;;  %s5252_s9 = inlined_call_operand.hbm [shape: bf16[2,128,128], index: 9, kind: input, shape index: {}]   ;;  %s5253_s10 = inlined_call_operand.hbm [shape: f32[128,128], index: 10, kind: output, shape index: {}]  }
   0x1   :  { %5274 = sst [smem:[#allocation23_spill]] %s5245_s2 }
   0x2   :  { %5275 = sst [smem:[#allocation24_spill]] %s5246_s3 }
   0x3   :  { %5276 = sst [smem:[#allocation25_spill]] %s5247_s4 }
   0x4   :  { %5277 = sst [smem:[#allocation26_spill]] %s5248_s5 }
   0x5   :  { %5278 = sst [smem:[#allocation27_spill]] %s5253_s10 }
   0x6   :  { %15 = vsyncpa [#allocation3], 0 }
   0x7   :  { %16 = vsyncpa [#allocation6], 0 }
   0x8   :  { %18 = vsyncpa [#allocation6 + $0x1], 0 }
   0x9   :  { %19 = vsyncpa [#allocation4], 0 }
   0xa   :  { %21 = vsyncpa [#allocation4 + $0x1], 0  ;;  %s4309_s13 = smov 0   ;;  %s4311_s14 = smov 0  }
   0xb   :  { %s4313_s15 = smov 0   ;;  %s4315_s16 = smov 0  }
   0xc   :  { %s4317_s17 = smov 0   ;;  %s4319_s18 = smov 0  }
   0xd   :  { %s4321_s19 = smov 0   ;;  %s4323_s20 = smov 0  }
   0xe   :  { %s4325_s21 = smov 0   ;;  %s4327_s22 = smov 0  }
   0xf   :  { %s4329_s23 = smov 0  }
  0x10 LB: > { %5279 = sst [smem:[#allocation12_spill]] %s4198_s13  ;;  %s36_s24 = sadd.s32 1, %s4230_s21  ;;  %s4238_s23 = sphi %s4329_s23, %s27_s23   ;;  %s4234_s22 = sphi %s4327_s22, %s5323_s22   ;;  %s4230_s21 = sphi %s4325_s21, %s5322_s21   ;;  %s4226_s20 = sphi %s4323_s20, %s5328_s20   ;;  %s4222_s19 = sphi %s4321_s19, %s5320_s19   ;;  %s4218_s18 = sphi %s4319_s18, %s5319_s18   ;;  %s4214_s17 = sphi %s4317_s17, %s5327_s17   ;;  %s4210_s16 = sphi %s4315_s16, %s5326_s16   ;;  %s4206_s15 = sphi %s4313_s15, %s5317_s15   ;;  %s4202_s14 = sphi %s4311_s14, %s5325_s14   ;;  %s4198_s13 = sphi %s4309_s13, %s5324_s13  }
  0x11   : > { %5280 = sst [smem:[#allocation13_spill]] %s4206_s15  ;;  %s39_s25 = sadd.s32 1, %s4234_s22 }
  0x12   : > { %5281 = sst [smem:[#allocation14_spill]] %s4218_s18  ;;  %p37_p0 = scmp.ge.s32.totalorder %s36_s24, 2 }
  0x13   : > { %5282 = sst [smem:[#allocation15_spill]] %s4230_s21  ;;  %s156_s26 = sadd.s32 1, %s4218_s18 }
  0x14   : > { %5283 = sst [smem:[#allocation16_spill]] %s4234_s22  ;;  %p163_p1 = scmp.ne.s32.totalorder %s4218_s18, %s4214_s17 }
  0x15   : > { %5284 = sst [smem:[#allocation17_spill]] %s4238_s23  ;;  %p164_p2 = scmp.eq.s32.totalorder %s4238_s23, 0 }
  0x16   : > { %s5330_s24 = smov (%p37_p0, %s36_s24), 0  ;;  %s5332_s25 = smov (!%p37_p0, %s39_s25), %s4234_s22 }
  0x17   : > { %5285 = sst [smem:[#allocation18_spill]] %s5330_s24  ;;  %s153_s27 = ssub.s32 %s4230_s21, %s5330_s24 }
  0x18   : > { %p165_p3 = por %p164_p2, %p163_p1  ;;  %p41_p4 = scmp.ge.s32.totalorder %s5332_s25, 2 }
  0x19   : > { %p154_p5 = scmp.eq.s32.totalorder %s153_s27, 0  ;;  %p3698_p6 = scmp.lt.s32.totalorder %s4238_s23, 4 }
  0x1a   : > { %s5334_s25 = smov (%p41_p4, %s5332_s25), 0  ;;  %s354_s29 = sand.u32 1, %s4238_s23  }
  0x1b   : > { %5286 = sst [smem:[#allocation19_spill]] %s5334_s25  ;;  %s283_s30 = ssub.s32 %s4234_s22, %s5334_s25 }
  0x1c   : > { %s4379_s28 = scalar_select %p154_p5, %s4218_s18, %s156_s26  }
  0x1d   : > { %s5258_s11 = sand.u32 1, %s4218_s18   ;;  %s3669_s12 = smul.u32 3072, %s4230_s21 }
  0x1e   : > { %5287 = sst [smem:[#allocation20_spill]] %s4379_s28  ;;  %s3668_s10 = smul.u32 192, %s5258_s11 }
  0x1f   : > { %p4388_p7 = pnand %p3698_p6, %p165_p3  ;;  %s5289_s5 = sld [smem:[#allocation26_spill]] }
  0x20   : > { %s358_s26 = scalar_lea.vmem [#allocation5], %s3668_s10  ;;  %p4397_p8 = scmp.eq.s32.totalorder %s283_s30, 0 }
  0x21   : > { %s5288_s4 = scalar_select %p4388_p7, 1, 0 }
  0x22   : > { %s365_s25 = sshll.u32 %s358_s26, 4  ;;  %s4403_s11 = scalar_lea.sflag [#allocation6], %s354_s29  ;;  %s4401_s25 = int_to_ptr.vmem [resolvable:$true] %s365_s25 }
  0x23   : > { %p5267_p10 = pneg %p4388_p7 }
  0x25   : > { %s4395_s27 = scalar_lea.hbm %s5289_s5, %s3669_s12  ;;  %s4029_s10 = scalar_lea.hbm %s5289_s5, 6144 }
  0x26   : > { %s4024_s28 = scalar_lea.hbm %s4395_s27, 3072  ;;  %p4030_p13 = scmp.lt.u32.totalorder %s4395_s27, %s5289_s5 }
  0x27   : > { %p4025_p9 = scmp.ne.s32.totalorder %s4395_s27, %s4024_s28  ;;  %p4031_p0 = scmp.lt.u32.totalorder %s4029_s10, %s4024_s28 }
  0x28   : > { %p4033_p2 = scmp.lt.u32.totalorder %s4024_s28, %s4395_s27 }
  0x29   : > { %p4027_p11 = pnand %p5267_p10, %p4025_p9  ;;  %p4032_p1 = por %p4031_p0, %p4030_p13 }
  0x2b   : > { %p4028_p12 = pneg %p4027_p11  ;;  %p4034_p3 = por %p4033_p2, %p4032_p1 }
  0x2d   : > { %p4035_p4 = pnand %p4034_p3, %p4028_p12 }
  0x2f   : > { %4038 = shalt.err (!%p4035_p4)
}
  0x30   : > { %s4039_s29 = scalar_lea.vmem %s4401_s25, 3072  ;;  %s4240_s26 = smov [#allocation5]  }
  0x31   : > { %p4040_p5 = scmp.ne.s32.totalorder %s4401_s25, %s4039_s29  ;;  %s4044_s2 = sshll.u32 %s4240_s26, 4  ;;  %s4045_s2 = int_to_ptr.vmem [resolvable:$false] %s4044_s2 }
  0x32   : > { %s4046_s24 = scalar_lea.vmem %s4045_s2, 6144  ;;  %p4047_p11 = scmp.lt.s32.totalorder %s4401_s25, %s4045_s2 }
  0x33   : > { %p4042_p6 = pnand %p4040_p5, %p5267_p10  ;;  %p4048_p13 = scmp.lt.s32.totalorder %s4046_s24, %s4039_s29 }
  0x35   : > { %p4043_p9 = pneg %p4042_p6  ;;  %p4049_p0 = por %p4048_p13, %p4047_p11 }
  0x37   : > { %p4050_p1 = pnand %p4049_p0, %p4043_p9 }
  0x39   : > { %4053 = shalt.err (!%p4050_p1)
}
  0x3a   : > { %s4241_s28 = smov 192   ;;  %s4242_s10 = smov 12  }
  0x3b   : > { %3689 = dma.hbm_to_vmem [thread:$0]  (!%p4388_p7), %s4395_s27, 3072, %s4401_s25, %s4403_s11, %s4241_s28, %s4241_s28, %s4242_s10  }
  0x3c   : > { %s5291_s30 = sand.u32 1, %s4218_s18   ;;  %s4434_s29 = sadd.s32 4294967295, %s4238_s23  }
  0x3d   : > { %s3069_s12 = sshll.u32 %s5291_s30, 6  ;;  %s3064_s26 = sadd.s32 4294967294, %s4238_s23  }
  0x3e   : > { %p169_p12 = scmp.ne.s32.totalorder %s4214_s17, %s4210_s16  ;;  %p5266_p2 = scmp.eq.s32.totalorder %s4434_s29, 0 }
  0x3f   : > { %s286_s2 = sadd.s32 1, %s4206_s15  ;;  %p296_p4 = scmp.ne.s32.totalorder %s4206_s15, %s4202_s14 }
  0x40   : > { %s4444_s24 = scalar_select %p4397_p8, %s4206_s15, %s286_s2  }
  0x41   : > { %p4448_p3 = por %p5266_p2, %p169_p12  ;;  %p297_p5 = scmp.eq.s32.totalorder %s4434_s29, 3 }
  0x42   : > { %5292 = sst [smem:[#allocation21_spill]] %s4444_s24  ;;  %p302_p6 = scmp.ne.s32.totalorder %s4202_s14, %s4198_s13 }
  0x43   : > { %s5293_s5 = scalar_select %p4448_p3, 1, 0 }
  0x44   : > { %p303_p9 = scmp.eq.s32.totalorder %s3064_s26, 3  ;;  %p3065_p11 = scmp.ge.s32.totalorder %s4238_s23, 1 }
  0x45   : > { %p4458_p13 = por %p297_p5, %p296_p4  ;;  %p310_p0 = scmp.lt.s32.totalorder %s4238_s23, 5 }
  0x46   : > { %p4463_p1 = por %p303_p9, %p302_p6  ;;  %s4243_s27 = smov [#allocation2]  }
  0x47   : > { %s5294_s25 = scalar_select %p4458_p13, 1, 0 }
  0x48   : > { %s5295_s16 = scalar_select %p4463_p1, 1, 0 }
  0x49   : > { %p4467_p8 = pnand %p3065_p11, %p310_p0  ;;  %s328_s28 = sshll.u32 %s4243_s27, 4  ;;  %s4473_s28 = int_to_ptr.vmem [resolvable:$true] %s328_s28 }
  0x4a   : > { %5296 = sst [smem:[#allocation22_spill]] %s5295_s16  ;;  %s3197_s10 = sshll.u32 %s4230_s21, 10 }
  0x4b   : > { %s5297_s22 = scalar_select %p4467_p8, 1, 0 }
  0x4c   : > { %p3682_p12 = pneg %p4467_p8  ;;  %s4485_s18 = scalar_lea.hbm %s5252_s9, %s3197_s10 }
  0x4d   : > { %s400_s24 = scalar_lea.vmem [#allocation7], %s3069_s12  ;;  %s5299_s3 = sld [smem:[#allocation24_spill]] }
  0x4e   : > { %p4478_p4 = pnand %p3682_p12, %p5266_p2  ;;  %s407_s15 = sshll.u32 %s400_s24, 4  ;;  %s4487_s15 = int_to_ptr.vmem [resolvable:$true] %s407_s15 }
  0x50   : > { %p4056_p6 = pneg %p4478_p4 }
  0x53   : > { %s4054_s13 = scalar_lea.hbm %s5299_s3, 1024 }
  0x54   : > { %p4055_p5 = scmp.ne.s32.totalorder %s5299_s3, %s4054_s13  ;;  %p4061_p0 = scmp.lt.u32.totalorder %s4054_s13, %s5299_s3 }
  0x56   : > { %p4057_p9 = pnand %p4056_p6, %p4055_p5 }
  0x58   : > { %p4058_p11 = pneg %p4057_p9 }
  0x5a   : > { %p4063_p12 = pnand %p4061_p0, %p4058_p11 }
  0x5c   : > { %4066 = shalt.err (!%p4063_p12)
}
  0x5d   : > { %s4067_s12 = scalar_lea.vmem %s4473_s28, 1024  ;;  %p4075_p13 = scmp.lt.s32.totalorder %s4473_s28, %s4473_s28 }
  0x5e   : > { %p4068_p2 = scmp.ne.s32.totalorder %s4473_s28, %s4067_s12  ;;  %p4076_p3 = scmp.lt.s32.totalorder %s4067_s12, %s4067_s12 }
  0x60   : > { %p4070_p10 = pnand %p4068_p2, %p4056_p6  ;;  %p4077_p8 = por %p4076_p3, %p4075_p13 }
  0x62   : > { %p4071_p1 = pneg %p4070_p10 }
  0x64   : > { %p4078_p7 = pnand %p4077_p8, %p4071_p1 }
  0x66   : > { %4081 = shalt.err (!%p4078_p7)
}
  0x67   : > { %s4244_s21 = smov 64   ;;  %s4245_s13 = smov 4  }
  0x68   : > { %3685 = dma.hbm_to_vmem [thread:$0]  (!%p4478_p4), %s5299_s3, 1024, %s4473_s28, [#allocation3], %s4244_s21, %s4244_s21, %s4245_s13  }
  0x69   : > { %s4082_s16 = scalar_lea.hbm %s4485_s18, 1024  ;;  %p5300_p7 = scmp.ne.s32.totalorder %s5288_s4, 0 }
  0x6a   : > { %p4083_p10 = scmp.ne.s32.totalorder %s4485_s18, %s4082_s16  ;;  %s4087_s26 = scalar_lea.hbm %s5252_s9, 2048 }
  0x6b   : > { %p5301_p2 = pneg %p5300_p7  ;;  %p4088_p1 = scmp.lt.u32.totalorder %s4485_s18, %s5252_s9 }
  0x6c   : > { %p4089_p8 = scmp.lt.u32.totalorder %s4087_s26, %s4082_s16  ;;  %p4091_p6 = scmp.lt.u32.totalorder %s4082_s16, %s4485_s18 }
  0x6d   : > { %p4085_p3 = pnand %p4083_p10, %p5301_p2 }
  0x6e   : > { %p4090_p5 = por %p4089_p8, %p4088_p1 }
  0x6f   : > { %p4086_p13 = pneg %p4085_p3 }
  0x70   : > { %p4092_p9 = por %p4091_p6, %p4090_p5 }
  0x72   : > { %p4093_p11 = pnand %p4092_p9, %p4086_p13 }
  0x74   : > { %4096 = shalt.err (!%p4093_p11)
}
  0x75   : > { %s4097_s28 = scalar_lea.vmem %s4487_s15, 1024  ;;  %p5302_p0 = pmov %p5301_p2 }
  0x76   : > { %p4098_p4 = scmp.ne.s32.totalorder %s4487_s15, %s4097_s28  ;;  %s4246_s30 = smov [#allocation7]  }
  0x77   : > { %s4102_s23 = sshll.u32 %s4246_s30, 4  ;;  %s4103_s23 = int_to_ptr.vmem [resolvable:$false] %s4102_s23 }
  0x78   : > { %p4100_p12 = pnand %p4098_p4, %p5302_p0  ;;  %s4104_s24 = scalar_lea.vmem %s4103_s23, 2048 }
  0x79   : > { %p4105_p2 = scmp.lt.s32.totalorder %s4487_s15, %s4103_s23  ;;  %p4106_p3 = scmp.lt.s32.totalorder %s4104_s24, %s4097_s28 }
  0x7a   : > { %p4101_p10 = pneg %p4100_p12 }
  0x7b   : > { %p4107_p1 = por %p4106_p3, %p4105_p2 }
  0x7d   : > { %p4108_p8 = pnand %p4107_p1, %p4101_p10 }
  0x7f   : > { %4111 = shalt.err (!%p4108_p8)
}
  0x80   : > { %3692 = dma.hbm_to_vmem [thread:$0]  (!%p5300_p7), %s4485_s18, 1024, %s4487_s15, %s4403_s11, %s4244_s21, %s4244_s21, %s4245_s13  }
  0x81   : > { %p5303_p13 = scmp.ne.s32.totalorder %s5297_s22, 0 }
  0x82   : > { %p5304_p5 = scmp.eq.s32.totalorder (!%p5303_p13), %s4434_s29, 0 }
  0x83   : > { %419 = sbr.rel (%p5303_p13) target bundleno = 2957 (0xb8d), region = 60 }
  0x8a   : > { %4185 = dma.done.wait (%p5304_p5), [#allocation3], 1024   ;;  %p5305_p6 = pmov %p5304_p5 }
  0x8b   : > { %s425_s4 = sand.u32 1, %s4434_s29   ;;  %s427_s16 = sand.u32 1, %s4214_s17  }
  0x8c   : > { %4187 = vsyncadd (%p5305_p6), [#allocation3], 4294966272  ;;  %s3670_s10 = smul.u32 192, %s427_s16  ;;  %s426_s27 = scalar_lea.sflag [#allocation6], %s425_s4 }
  0x8d   : > { %p5306_p9 = scmp.ne.s32.totalorder %s5293_s5, 0 }
  0x8e   : > { %s4548_s26 = scalar_lea.vmem [#allocation5], %s3670_s10 }
  0x8f   : > { %4189 = dma.done.wait (%p5306_p9), %s426_s27, 4096  }
  0x90   : > { %4191 = vsyncadd (%p5306_p9), %s426_s27, 4294963200  ;;  %s3074_s15 = sshll.u32 %s427_s16, 6  ;;  %s5273_s18 = sand.u32 1, %s4202_s14  }
  0x91   : > { %s3075_s11 = sshll.u32 %s5273_s18, 6  ;;  %s3076_s29 = sshll.u32 %s4226_s20, 3 }
  0x92   : > { %p498_p7 = scmp.lt.s32.totalorder %s3076_s29, 15  ;;  %p503_p11 = scmp.lt.s32.totalorder %s4222_s19, 1 }
  0x93   : > { %s4583_s21 = scalar_lea.vmem [#allocation8], %s3075_s11  ;;  %p3080_p4 = scmp.ne.s32.totalorder %s4222_s19, 0 }
  0x94   : > { %s5336_s29 = smov (!%p498_p7, %s3076_s29), 15  ;;  %v533_v0 = vld [vmem:[%s5244_s1] sm:$0x3] (!%p3080_p4)  ;;  %vm554_vm0 = vcmask (!%p3080_p4), 1041408   ;;  %vm541_vm1 = vcmask (!%p3080_p4), 31744   ;;  %v3800_v14 = vld [vmem:[#allocation2] sm:$0xff] (!%p3080_p4)  }
  0x95   : > { %s4560_s22 = scalar_select %p503_p11, %s4222_s19, 1 }
  0x96   : > { %s3077_s5 = sshll.u32 %s5336_s29, 3  ;;  %s4581_s29 = scalar_lea.vmem [#allocation7], %s3074_s15  ;;  %3651 = vmatprep.subr.msk.bf16.mxu0 (!%p3080_p4), %vm554_vm0, %v533_v0  ;;  %v556_v3 = vsel (!%p3080_p4), %vm554_vm0, %v533_v0, 0  ;;  %3587 = vmatprep.subr.bf16.mxu1 (!%p3080_p4), %v3800_v14  ;;  %v3801_v15 = vld [vmem:[#allocation2 + $0x8] sm:$0xff] (!%p3080_p4)   ;;  %v3802_v16 = vld [vmem:[#allocation2 + $0x10] sm:$0xff] (!%p3080_p4)   ;;  %v3803_v17 = vld [vmem:[#allocation2 + $0x18] sm:$0xff] (!%p3080_p4)  }
  0x97   : > { %s501_s2 = scalar_lea.vmem %s5243_s0, %s3077_s5  ;;  %s3671_s12 = smul.u32 3, %s4560_s22  ;;  %3330 = vmatpush3.bf16.msra.mxu0 (!%p3080_p4), %v556_v3  ;;  %3595 = vmatpush3.bf16.msra.mxu1 (!%p3080_p4), %v3800_v14  ;;  %v3804_v18 = vld [vmem:[#allocation2 + $0x20] sm:$0xff] (!%p3080_p4)   ;;  %v3805_v19 = vld [vmem:[#allocation2 + $0x28] sm:$0xff] (!%p3080_p4)   ;;  %v3806_v20 = vld [vmem:[#allocation2 + $0x30] sm:$0xff] (!%p3080_p4)  }
  0x98   : > { %s3198_s28 = sshll.u32 %s4560_s22, 6  ;;  %s514_s24 = scalar_lea.vmem %s5251_s8, %s4560_s22  ;;  %v521_v1 = vld [vmem:[%s501_s2] sm:$0xff] (!%p3080_p4)  ;;  %v522_v2 = vld [vmem:[%s501_s2 + $0x8] sm:$0xff] (!%p3080_p4)  ;;  %v523_v5 = vld [vmem:[%s501_s2 + $0x10] sm:$0xff] (!%p3080_p4)  ;;  %3339 = vmatprep.subr.bf16.mxu0 (!%p3080_p4), %v3800_v14  ;;  %3588 = vmatprep.subr.bf16.mxu1 (!%p3080_p4), %v3801_v15 }
  0x99   : > { %s4574_s10 = scalar_lea.vmem %s5249_s6, %s3671_s12  ;;  %s4579_s3 = scalar_lea.vmem %s5250_s7, %s3198_s28  ;;  %v529_v4 = vpack.c.bf16 (!%p3080_p4), %v522_v2, %v521_v1  ;;  %v524_v6 = vld [vmem:[%s501_s2 + $0x18] sm:$0xff] (!%p3080_p4)  ;;  %v525_v7 = vld [vmem:[%s501_s2 + $0x20] sm:$0xff] (!%p3080_p4)  ;;  %v526_v9 = vld [vmem:[%s501_s2 + $0x28] sm:$0xff] (!%p3080_p4) }
  0x9a   : > { %520 = sbr.rel (%p3080_p4) target bundleno = 632 (0x278), region = 76  ;;  %v530_v8 = vpack.c.bf16 (!%p3080_p4), %v524_v6, %v523_v5  ;;  %v531_v10 = vpack.c.bf16 (!%p3080_p4), %v526_v9, %v525_v7  ;;  %v527_v11 = vld [vmem:[%s501_s2 + $0x30] sm:$0xff] (!%p3080_p4)  ;;  %v528_v12 = vld [vmem:[%s501_s2 + $0x38] sm:$0xff] (!%p3080_p4)  ;;  %v3807_v21 = vld [vmem:[#allocation2 + $0x38] sm:$0xff] (!%p3080_p4)   ;;  %s5307_s18 = sld [smem:[#allocation23_spill]] (!%p3080_p4) }
  0x9b   : > { %3331 = vmatprep.mubr.msk.bf16.mxu0 (!%p3080_p4), %vm541_vm1, %v529_v4  ;;  %v532_v13 = vpack.c.bf16 (!%p3080_p4), %v528_v12, %v527_v11  ;;  %3596 = vmatpush3.bf16.msra.mxu1 (!%p3080_p4), %v3801_v15  ;;  %s5308_s12 = sld [smem:[#allocation25_spill]] (!%p3080_p4) }
  0x9c   : > { %3332 = vmatmul.mubr.msk.bf16.vlgmr.msra.gmra.mrb[0].mxu0 (!%p3080_p4), %vm541_vm1, %v530_v8  ;;  %3589 = vmatprep.subr.bf16.mxu1 (!%p3080_p4), %v3802_v16 }
  0x9d   : > { %3335 = vmatprep.mubr.msk.bf16.mxu0 (!%p3080_p4), %vm541_vm1, %v531_v10  ;;  %3340 = vmatpush3.bf16.msra.mxu0 (!%p3080_p4), %v3800_v14 }
  0x9e   : > { %3341 = vmatprep.subr.bf16.mxu0 (!%p3080_p4), %v3801_v15 }
  0x9f   : > { %3597 = vmatpush3.bf16.msra.mxu1 (!%p3080_p4), %v3802_v16 }
  0xa0   : > { %3590 = vmatprep.subr.bf16.mxu1 (!%p3080_p4), %v3803_v17  ;;  %v3081_v22 = vld [vmem:[%s5307_s18] ss:$0 sm:$0xff] (!%p3080_p4) }
  0xa1   : > { %3342 = vmatpush3.bf16.msra.mxu0 %v3801_v15 }
  0xa2   : > { %3343 = vmatprep.subr.bf16.mxu0 %v3802_v16 }
  0xa3   : > { %3598 = vmatpush3.bf16.msra.mxu1 %v3803_v17 }
  0xa4   : > { %3336 = vmatmul.mubr.msk.bf16.gmra.mrb[4].mxu0 %vm541_vm1, %v532_v13  ;;  %3591 = vmatprep.subr.bf16.mxu1 %v3804_v18 }
  0xa5   : > { %3344 = vmatpush3.bf16.msra.mxu0 %v3802_v16 }
  0xa6   : > { %3345 = vmatprep.subr.bf16.mxu0 %v3803_v17 }
  0xa7   : > { %3599 = vmatpush3.bf16.msra.mxu1 %v3804_v18 }
  0xa8   : > { %3592 = vmatprep.subr.bf16.mxu1 %v3805_v19 }
  0xa9   : > { %3346 = vmatpush3.bf16.msra.mxu0 %v3803_v17 }
  0xaa   : > { %3347 = vmatprep.subr.bf16.mxu0 %v3804_v18 }
  0xab   : > { %3600 = vmatpush3.bf16.msra.mxu1 %v3805_v19 }
  0xac   : > { %3593 = vmatprep.subr.bf16.mxu1 %v3806_v20 }
  0xad   : > { %3348 = vmatpush3.bf16.msra.mxu0 %v3804_v18 }
  0xae   : > { %3349 = vmatprep.subr.bf16.mxu0 %v3805_v19 }
  0xaf   : > { %3601 = vmatpush3.bf16.msra.mxu1 %v3806_v20 }
  0xb0   : > { %3594 = vmatprep.subr.bf16.mxu1 %v3807_v21 }
  0xb1   : > { %3350 = vmatpush3.bf16.msra.mxu0 %v3805_v19 }
  0xb2   : > { %3351 = vmatprep.subr.bf16.mxu0 %v3806_v20 }
  0xb3   : > { %3602 = vmatpush3.bf16.msra.mxu1 %v3807_v21 }
  0xb5   : > { %3352 = vmatpush3.bf16.msra.mxu0 %v3806_v20  ;;  %v3102_v20 = vld [vmem:[%s5308_s12] ss:$0 sm:$0xff] }
  0xb6   : > { %3353 = vmatprep.subr.bf16.mxu0 %v3807_v21 }
  0xb9   : > { %3354 = vmatpush3.bf16.msra.mxu0 %v3807_v21 }
 0x16f   : > { %v3333_v23 = vpop.f32.mrb[0].mxu0 }
 0x170   : > { %v601_v24 = vadd.f32 %v3333_v23, %v3081_v22  ;;  %v592_v25 = vpop.f32.mrb[1].mxu0 }
 0x171   : > { %v593_v26 = vadd.f32 %v3081_v22, %v592_v25  ;;  %v3334_v27 = vpop.f32.mrb[2].mxu0 }
 0x172   : > { %v3088_v28 = vmul.f32 -1.442695, %v601_v24  ;;  %v604_v29 = vadd.f32 %v3334_v27, %v3081_v22  ;;  %v595_v30 = vpop.f32.mrb[3].mxu0 }
 0x173   : > { %v3086_v31 = vmul.f32 -1.442695, %v593_v26  ;;  %v596_v32 = vadd.f32 %v3081_v22, %v595_v30 }
 0x174   : > { %3808 = vpow2.f32 %v3088_v28  ;;  %v3089_v33 = vmul.f32 -1.442695, %v604_v29 }
 0x175   : > { %3810 = vpow2.f32 %v3086_v31  ;;  %v3087_v34 = vmul.f32 -1.442695, %v596_v32 }
 0x176   : > { %3812 = vpow2.f32 %v3089_v33 }
 0x177   : > { %3814 = vpow2.f32 %v3087_v34  ;;  %v3337_v35 = vpop.f32.mrb[4].mxu0 }
 0x178   : > { %v617_v36 = vadd.f32 %v3337_v35, %v3081_v22  ;;  %v608_v37 = vpop.f32.mrb[5].mxu0 }
 0x179   : > { %v609_v38 = vadd.f32 %v3081_v22, %v608_v37  ;;  %v3338_v39 = vpop.f32.mrb[6].mxu0 }
 0x17a   : > { %v3092_v40 = vmul.f32 -1.442695, %v617_v36  ;;  %v620_v41 = vadd.f32 %v3338_v39, %v3081_v22  ;;  %v611_v42 = vpop.f32.mrb[7].mxu0 }
 0x17b   : > { %v3090_v43 = vmul.f32 -1.442695, %v609_v38  ;;  %v612_v44 = vadd.f32 %v3081_v22, %v611_v42 }
 0x17c   : > { %3816 = vpow2.f32 %v3092_v40  ;;  %v3093_v45 = vmul.f32 -1.442695, %v620_v41 }
 0x17d   : > { %3818 = vpow2.f32 %v3090_v43  ;;  %v3091_v46 = vmul.f32 -1.442695, %v612_v44 }
 0x17e   : > { %v3809_v47 = vpop.eup %3808  ;;  %3820 = vpow2.f32 %v3093_v45 }
 0x17f   : > { %v3811_v48 = vpop.eup %3810  ;;  %v649_v49 = vadd.f32 1.0, %v3809_v47  ;;  %3822 = vpow2.f32 %v3091_v46 }
 0x180   : > { %v3813_v50 = vpop.eup %3812  ;;  %v647_v51 = vadd.f32 1.0, %v3811_v48 }
 0x181   : > { %v3815_v52 = vpop.eup %3814  ;;  %3824 = vrcp.f32 %v649_v49  ;;  %v650_v53 = vadd.f32 1.0, %v3813_v50 }
 0x182   : > { %3826 = vrcp.f32 %v647_v51  ;;  %v648_v54 = vadd.f32 1.0, %v3815_v52 }
 0x183   : > { %3828 = vrcp.f32 %v650_v53 }
 0x184   : > { %3830 = vrcp.f32 %v648_v54 }
 0x186   : > { %v3817_v55 = vpop.eup %3816 }
 0x187   : > { %v3819_v56 = vpop.eup %3818  ;;  %v653_v57 = vadd.f32 1.0, %v3817_v55 }
 0x188   : > { %v3821_v58 = vpop.eup %3820  ;;  %v651_v59 = vadd.f32 1.0, %v3819_v56 }
 0x189   : > { %v3823_v60 = vpop.eup %3822  ;;  %3832 = vrcp.f32 %v653_v57  ;;  %v654_v61 = vadd.f32 1.0, %v3821_v58 }
 0x18a   : > { %3834 = vrcp.f32 %v651_v59  ;;  %v652_v62 = vadd.f32 1.0, %v3823_v60 }
 0x18b   : > { %v3825_v63 = vpop.eup %3824  ;;  %3836 = vrcp.f32 %v654_v61 }
 0x18c   : > { %v3827_v0 = vpop.eup %3826  ;;  %3838 = vrcp.f32 %v652_v62  ;;  %v673_v6 = vmul.f32 %v3825_v63, %v601_v24 }
 0x18d   : > { %v3829_v1 = vpop.eup %3828  ;;  %v671_v4 = vmul.f32 %v3827_v0, %v593_v26 }
 0x18e   : > { %v3831_v2 = vpop.eup %3830  ;;  %v674_v3 = vmul.f32 %v3829_v1, %v604_v29 }
 0x18f   : > { %v672_v5 = vmul.f32 %v3831_v2, %v596_v32 }
 0x190   : > { %v680_v8 = vpack.c.bf16 %v674_v3, %v673_v6 }
 0x191   : > { %v679_v7 = vpack.c.bf16 %v672_v5, %v671_v4 }
 0x193   : > { %v3833_v9 = vpop.eup %3832  ;;  %3355 = vmatprep.mubr.bf16.mxu0 %v679_v7 }
 0x194   : > { %v3835_v10 = vpop.eup %3834  ;;  %3356 = vmatmul.mubr.bf16.vlgmr.msra.gmra.mrb[8].mxu0 %v680_v8  ;;  %v677_v16 = vmul.f32 %v3833_v9, %v617_v36 }
 0x195   : > { %v3837_v11 = vpop.eup %3836  ;;  %v675_v14 = vmul.f32 %v3835_v10, %v609_v38 }
 0x196   : > { %v3839_v12 = vpop.eup %3838  ;;  %v678_v13 = vmul.f32 %v3837_v11, %v620_v41 }
 0x197   : > { %v676_v15 = vmul.f32 %v3839_v12, %v612_v44 }
 0x198   : > { %v682_v18 = vpack.c.bf16 %v678_v13, %v677_v16 }
 0x199   : > { %v681_v17 = vpack.c.bf16 %v676_v15, %v675_v14 }
 0x19b   : > { %3359 = vmatprep.mubr.bf16.mxu1 %v681_v17 }
 0x19c   : > { %3360 = vmatmul.mubr.bf16.vlgmr.msra.gmra.mrb[0].mxu1 %v682_v18 }
 0x267   : > { %v3357_v19 = vpop.f32.mrb[8].mxu0 }
 0x268   : > { %v814_v21 = vadd.f32 %v3357_v19, %v673_v6  ;;  %v781_v22 = vpop.f32.mrb[9].mxu0 }
 0x269   : > { %v812_v23 = vadd.f32 %v781_v22, %v671_v4  ;;  %v3358_v24 = vpop.f32.mrb[10].mxu0 }
 0x26a   : > { %v829_v25 = vadd.f32 %v3102_v20, %v814_v21  ;;  %v815_v26 = vadd.f32 %v3358_v24, %v674_v3  ;;  %v784_v27 = vpop.f32.mrb[11].mxu0 }
 0x26b   : > { %v827_v28 = vadd.f32 %v3102_v20, %v812_v23  ;;  %v813_v29 = vadd.f32 %v784_v27, %v672_v5 }
 0x26c   : > { %837 = vst [vmem:[%s4583_s21 + $0x10] sm:$0xff] %v829_v25  ;;  %v830_v30 = vadd.f32 %v3102_v20, %v815_v26 }
 0x26d   : > { %835 = vst [vmem:[%s4583_s21] sm:$0xff] %v827_v28  ;;  %v828_v31 = vadd.f32 %v3102_v20, %v813_v29 }
 0x26e   : > { %838 = vst [vmem:[%s4583_s21 + $0x18] sm:$0xff] %v830_v30 }
 0x26f   : > { %836 = vst [vmem:[%s4583_s21 + $0x8] sm:$0xff] %v828_v31  ;;  %v3361_v32 = vpop.f32.mrb[0].mxu1 }
 0x270   : > { %v818_v33 = vadd.f32 %v3361_v32, %v677_v16  ;;  %v797_v34 = vpop.f32.mrb[1].mxu1 }
 0x271   : > { %v816_v35 = vadd.f32 %v797_v34, %v675_v14  ;;  %v3362_v36 = vpop.f32.mrb[2].mxu1 }
 0x272   : > { %v833_v37 = vadd.f32 %v3102_v20, %v818_v33  ;;  %v819_v38 = vadd.f32 %v3362_v36, %v678_v13  ;;  %v800_v39 = vpop.f32.mrb[3].mxu1 }
 0x273   : > { %v831_v40 = vadd.f32 %v3102_v20, %v816_v35  ;;  %v817_v41 = vadd.f32 %v800_v39, %v676_v15 }
 0x274   : > { %841 = vst [vmem:[%s4583_s21 + $0x30] sm:$0xff] %v833_v37  ;;  %v834_v42 = vadd.f32 %v3102_v20, %v819_v38 }
 0x275   : > { %839 = vst [vmem:[%s4583_s21 + $0x20] sm:$0xff] %v831_v40  ;;  %v832_v43 = vadd.f32 %v3102_v20, %v817_v41 }
 0x276   : > { %842 = vst [vmem:[%s4583_s21 + $0x38] sm:$0xff] %v834_v42 }
 0x277   : > { %840 = vst [vmem:[%s4583_s21 + $0x28] sm:$0xff] %v832_v43 }
 0x278 PF: > { %v3840_v44 = vld [vmem:[%s4548_s26 + $0x4] ss:$12 sps:$4 sm:$0xff]   ;;  %v3842_v45 = vld [vmem:[%s4548_s26] ss:$12 sps:$4 sm:$0xff]   ;;  %v4247_v46 = vmov 0   ;;  %v846_v1 = vld [vmem:[%s4583_s21 + $0x18] sm:$0xff]  ;;  %v889_v9 = vlaneseq }
 0x279   : > { %1064 = vmatprep.mubr.bf16.mxu0 %v4247_v46  ;;  %1032 = vmatprep.subr.bf16.mxu0 %v3840_v44  ;;  %v3843_v47 = vld [vmem:[%s4548_s26 + $0x1c] ss:$12 sps:$4 sm:$0xff]   ;;  %v3845_v48 = vld [vmem:[%s4548_s26 + $0x18] ss:$12 sps:$4 sm:$0xff]   ;;  %v3846_v49 = vld [vmem:[%s4548_s26 + $0x34] ss:$12 sps:$4 sm:$0xff]  }
 0x27a   : > { %1033 = vmatpush1.bf16.msra.mxu0 %v3842_v45  ;;  %v3848_v50 = vld [vmem:[%s4548_s26 + $0x30] ss:$12 sps:$4 sm:$0xff]   ;;  %v3849_v51 = vld [vmem:[%s4548_s26 + $0x4c] ss:$12 sps:$4 sm:$0xff]   ;;  %v843_v52 = vld [vmem:[%s4583_s21] sm:$0xff]  ;;  %v4640_v10 = vshrl.u32 %v889_v9, 7 }
 0x27b   : > { %1034 = vmatprep.subr.bf16.mxu0 %v3843_v47  ;;  %v3851_v53 = vld [vmem:[%s4548_s26 + $0x48] ss:$12 sps:$4 sm:$0xff]   ;;  %v3852_v55 = vld [vmem:[%s4548_s26 + $0x64] ss:$12 sps:$4 sm:$0xff]   ;;  %v3854_v57 = vld [vmem:[%s4548_s26 + $0x60] ss:$12 sps:$4 sm:$0xff]  }
 0x27c   : > { %v844_v54 = vld [vmem:[%s4583_s21 + $0x8] sm:$0xff]  ;;  %v3857_v59 = vld [vmem:[%s4548_s26 + $0x78] ss:$12 sps:$4 sm:$0xff]   ;;  %v3858_v60 = vld [vmem:[%s4548_s26 + $0x94] ss:$12 sps:$4 sm:$0xff]   ;;  %v891_v11 = vsub.s32 0, %v4640_v10 }
 0x27d   : > { %v851_v56 = vpack.c.bf16 %v844_v54, %v843_v52  ;;  %v3855_v58 = vld [vmem:[%s4548_s26 + $0x7c] ss:$12 sps:$4 sm:$0xff]   ;;  %v3861_v62 = vld [vmem:[%s4548_s26 + $0xac] ss:$12 sps:$4 sm:$0xff]   ;;  %v845_v0 = vld [vmem:[%s4583_s21 + $0x10] sm:$0xff]  ;;  %v895_v13 = vsub.s32 1, %v4640_v10 }
 0x27e   : > { %1035 = vmatpush1.bf16.msra.mxu0 %v3845_v48  ;;  %v3860_v61 = vld [vmem:[%s4548_s26 + $0x90] ss:$12 sps:$4 sm:$0xff]   ;;  %v3863_v63 = vld [vmem:[%s4548_s26 + $0xa8] ss:$12 sps:$4 sm:$0xff]   ;;  %v4627_v2 = vpack.c.bf16 %v846_v1, %v845_v0  ;;  %v847_v3 = vld [vmem:[%s4583_s21 + $0x20] sm:$0xff]  ;;  %vm1197_vm2 = vcmask 261120  }
 0x27f   : > { %1036 = vmatprep.subr.bf16.mxu0 %v3846_v49  ;;  %3379 = vmatprep.mubr.bf16.mxu1 %v851_v56  ;;  %v848_v4 = vld [vmem:[%s4583_s21 + $0x28] sm:$0xff]  ;;  %v849_v6 = vld [vmem:[%s4583_s21 + $0x30] sm:$0xff]  ;;  %v850_v7 = vld [vmem:[%s4583_s21 + $0x38] sm:$0xff]  ;;  %s4248_s28 = smov 96   ;;  %vm1287_vm3 = vcmask 523264   ;;  %s4250_s30 = smov 32  }
 0x280   : > { %v4632_v5 = vpack.c.bf16 %v848_v4, %v847_v3  ;;  %v4637_v8 = vpack.c.bf16 %v850_v7, %v849_v6  ;;  %v4644_v12 = vld [vmem:[%s4574_s10] sm:$0x7]  ;;  %v3864_v4 = vld [vmem:[%s4548_s26 + $0x8] ss:$12 sps:$4 sm:$0xff]   ;;  %v3865_v6 = vld [vmem:[%s4548_s26 + $0x20] ss:$12 sps:$4 sm:$0xff]  }
 0x281   : > { %v892_v14 = vrot.slane %v4644_v12, %v891_v11  ;;  %v896_v16 = vrot.slane %v4644_v12, %v895_v13  ;;  %3363 = vmatprep.subr.bf16.mxu1 %v3864_v4  ;;  %v3866_v9 = vld [vmem:[%s4548_s26 + $0x38] ss:$12 sps:$4 sm:$0xff]   ;;  %v3867_v13 = vld [vmem:[%s4548_s26 + $0x50] ss:$12 sps:$4 sm:$0xff]   ;;  %s3199_s22 = sshll.u32 %s4226_s20, 10  ;;  %s5309_s10 = sld [smem:[#allocation27_spill]] }
 0x282   : > { %1037 = vmatpush1.bf16.msra.mxu0 %v3848_v50  ;;  %3364 = vmatpush3.bf16.msra.mxu1 %v3864_v4  ;;  %s5310_s20 = sand.u32 1, %s4202_s14   ;;  %p5311_p12 = scmp.ne.s32.totalorder %s5294_s25, 0 }
 0x283   : > { %1038 = vmatprep.subr.bf16.mxu0 %v3849_v51  ;;  %3365 = vmatprep.subr.bf16.mxu1 %v3865_v6  ;;  %s4251_s13 = smov [#allocation8]  }
 0x284   : > { %s4116_s19 = sshll.u32 %s4251_s13, 4  ;;  %s4117_s19 = int_to_ptr.vmem [resolvable:$false] %s4116_s19 }
 0x285   : > { %s4118_s15 = scalar_lea.vmem %s4117_s19, 2048 }
 0x286   : > { %1039 = vmatpush1.bf16.msra.mxu0 %v3851_v53  ;;  %3366 = vmatpush3.bf16.msra.mxu1 %v3865_v6 }
 0x287   : > { %1040 = vmatprep.subr.bf16.mxu0 %v3852_v55  ;;  %3367 = vmatprep.subr.bf16.mxu1 %v3866_v9  ;;  %s5173_s27 = scalar_lea.hbm %s5309_s10, %s3199_s22 }
 0x28a   : > { %1041 = vmatpush1.bf16.msra.mxu0 %v3854_v57  ;;  %3368 = vmatpush3.bf16.msra.mxu1 %v3866_v9 }
 0x28b   : > { %1042 = vmatprep.subr.bf16.mxu0 %v3855_v58  ;;  %3369 = vmatprep.subr.bf16.mxu1 %v3867_v13 }
 0x28e   : > { %1043 = vmatpush1.bf16.msra.mxu0 %v3857_v59  ;;  %3370 = vmatpush3.bf16.msra.mxu1 %v3867_v13 }
 0x28f   : > { %1044 = vmatprep.subr.bf16.mxu0 %v3858_v60 }
 0x292   : > { %1045 = vmatpush1.bf16.msra.mxu0 %v3860_v61 }
 0x293   : > { %1046 = vmatprep.subr.bf16.mxu0 %v3861_v62 }
 0x296   : > { %1047 = vmatpush1.bf16.msra.mxu0 %v3863_v63 }
 0x299   : > { %1065 = vmatmul.mubr.bf16.vlgmr.msra.gmra.mrb[0].mxu0 %v851_v56 }
 0x29a   : > { %1074 = vmatprep.mubr.bf16.mxu0 %v4247_v46 }
 0x2a1   : > { %1075 = vmatmul.mubr.bf16.gmra.mrb[4].mxu0 %v4627_v2 }
 0x2a2   : > { %1084 = vmatprep.mubr.bf16.mxu0 %v4247_v46 }
 0x2a9   : > { %1085 = vmatmul.mubr.bf16.gmra.mrb[8].mxu0 %v4632_v5 }
 0x2aa   : > { %1094 = vmatprep.mubr.bf16.mxu0 %v4247_v46 }
 0x2b1   : > { %1095 = vmatmul.mubr.bf16.gmra.mrb[12].mxu0 %v4637_v8 }
 0x36c   : > { %v1066_v15 = vpop.f32.mrb[0].mxu0 }
 0x36d   : > { %v1068_v17 = vpop.f32.mrb[1].mxu0  ;;  %v1067_v19 = vadd.f32 %v1066_v15, %v892_v14  ;;  %v3868_v15 = vld [vmem:[%s4548_s26 + $0x68] ss:$12 sps:$4 sm:$0xff]  }
 0x36e   : > { %v1070_v18 = vpop.f32.mrb[2].mxu0  ;;  %v1069_v22 = vadd.f32 %v1068_v17, %v896_v16  ;;  %3371 = vmatprep.subr.bf16.mxu1 %v3868_v15  ;;  %v3869_v17 = vld [vmem:[%s4548_s26 + $0x80] ss:$12 sps:$4 sm:$0xff]  }
 0x36f   : > { %v1071_v20 = vadd.f32 %v1070_v18, %v892_v14  ;;  %v1072_v21 = vpop.f32.mrb[3].mxu0  ;;  %3372 = vmatpush3.bf16.msra.mxu1 %v3868_v15 }
 0x370   : > { %v1073_v23 = vadd.f32 %v1072_v21, %v896_v16  ;;  %3373 = vmatprep.subr.bf16.mxu1 %v3869_v17 }
 0x371   : > { %v4649_v24 = vpack.c.bf16 %v1071_v20, %v1067_v19  ;;  %v3870_v19 = vld [vmem:[%s4548_s26 + $0x98] ss:$12 sps:$4 sm:$0xff]   ;;  %v3871_v20 = vld [vmem:[%s4548_s26 + $0xb0] ss:$12 sps:$4 sm:$0xff]   ;;  %s4249_s26 = smov 64  }
 0x372   : > { %v4651_v25 = vpack.c.bf16 %v1073_v23, %v1069_v22 }
 0x373   : > { %3395 = vmatprep.mubr.msk.bf16.mxu0 %vm1197_vm2, %v4649_v24  ;;  %3374 = vmatpush3.bf16.msra.mxu1 %v3869_v17 }
 0x374   : > { %v1076_v26 = vpop.f32.mrb[4].mxu0  ;;  %1578 = vrot.lane.b32.xlu0 %v4651_v25, %s4248_s28  ;;  %3652 = vmatprep.subr.msk.bf16.mxu0 %vm1197_vm2, %v4651_v25  ;;  %v1211_v27 = vsel %vm1197_vm2, %v4651_v25, 0 }
 0x375   : > { %v1078_v28 = vpop.f32.mrb[5].mxu0  ;;  %3388 = vmatpush3.bf16.xpose.msra.mxu0 %v1211_v27  ;;  %v1077_v30 = vadd.f32 %v1076_v26, %v892_v14  ;;  %3375 = vmatprep.subr.bf16.mxu1 %v3870_v19 }
 0x376   : > { %v1080_v29 = vpop.f32.mrb[6].mxu0  ;;  %v1079_v33 = vadd.f32 %v1078_v28, %v896_v16 }
 0x377   : > { %v1081_v31 = vadd.f32 %v1080_v29, %v892_v14  ;;  %v1082_v32 = vpop.f32.mrb[7].mxu0  ;;  %3376 = vmatpush3.bf16.msra.mxu1 %v3870_v19 }
 0x378   : > { %v1083_v34 = vadd.f32 %v1082_v32, %v896_v16  ;;  %3377 = vmatprep.subr.bf16.mxu1 %v3871_v20 }
 0x379   : > { %v4661_v35 = vpack.c.bf16 %v1081_v31, %v1077_v30 }
 0x37a   : > { %v4663_v36 = vpack.c.bf16 %v1083_v34, %v1079_v33 }
 0x37b   : > { %3378 = vmatpush3.bf16.msra.mxu1 %v3871_v20 }
 0x37c   : > { %v1086_v37 = vpop.f32.mrb[8].mxu0  ;;  %1580 = vrot.lane.b32.xlu0 %v4663_v36, %s4248_s28  ;;  %3653 = vmatprep.subr.msk.bf16.mxu0 %vm1197_vm2, %v4663_v36  ;;  %v1214_v38 = vsel %vm1197_vm2, %v4663_v36, 0 }
 0x37d   : > { %v1088_v39 = vpop.f32.mrb[9].mxu0  ;;  %3390 = vmatpush3.bf16.xpose.msra.mxu0 %v1214_v38  ;;  %v1087_v41 = vadd.f32 %v1086_v37, %v892_v14 }
 0x37e   : > { %v1090_v40 = vpop.f32.mrb[10].mxu0  ;;  %v1089_v44 = vadd.f32 %v1088_v39, %v896_v16  ;;  %3380 = vmatmul.mubr.bf16.vlgmr.msra.gmra.mrb[0].mxu1 %v4627_v2 }
 0x37f   : > { %v1091_v42 = vadd.f32 %v1090_v40, %v892_v14  ;;  %v1092_v43 = vpop.f32.mrb[11].mxu0  ;;  %3383 = vmatprep.mubr.bf16.mxu1 %v4632_v5 }
 0x380   : > { %v1093_v45 = vadd.f32 %v1092_v43, %v896_v16  ;;  %1566 = vrot.lane.b32.xlu0 %v4649_v24, %s4248_s28 }
 0x381   : > { %v4673_v46 = vpack.c.bf16 %v1091_v42, %v1087_v41 }
 0x382   : > { %v4675_v47 = vpack.c.bf16 %v1093_v45, %v1089_v44 }
 0x384   : > { %v1096_v48 = vpop.f32.mrb[12].mxu0  ;;  %1582 = vrot.lane.b32.xlu1 %v4675_v47, %s4248_s28  ;;  %3654 = vmatprep.subr.msk.bf16.mxu0 %vm1197_vm2, %v4675_v47  ;;  %v1217_v49 = vsel %vm1197_vm2, %v4675_v47, 0 }
 0x385   : > { %1570 = vrot.lane.b32.xlu0 %v4673_v46, %s4248_s28  ;;  %v1098_v50 = vpop.f32.mrb[13].mxu0  ;;  %3392 = vmatpush3.bf16.xpose.msra.mxu0 %v1217_v49  ;;  %v1097_v52 = vadd.f32 %v1096_v48, %v892_v14 }
 0x386   : > { %v1100_v51 = vpop.f32.mrb[14].mxu0  ;;  %v1099_v55 = vadd.f32 %v1098_v50, %v896_v16  ;;  %3384 = vmatmul.mubr.bf16.gmra.mrb[4].mxu1 %v4637_v8 }
 0x387   : > { %v1101_v53 = vadd.f32 %v1100_v51, %v892_v14  ;;  %v1102_v54 = vpop.f32.mrb[15].mxu0 }
 0x388   : > { %v1103_v56 = vadd.f32 %v1102_v54, %v896_v16 }
 0x389   : > { %v4685_v57 = vpack.c.bf16 %v1101_v53, %v1097_v52 }
 0x38a   : > { %v4687_v58 = vpack.c.bf16 %v1103_v56, %v1099_v55 }
 0x38c   : > { %1584 = vrot.lane.b32.xlu1 %v4687_v58, %s4248_s28  ;;  %3655 = vmatprep.subr.msk.bf16.mxu0 %vm1197_vm2, %v4687_v58  ;;  %v1220_v59 = vsel %vm1197_vm2, %v4687_v58, 0 }
 0x38d   : > { %3394 = vmatpush3.bf16.xpose.msra.mxu0 %v1220_v59 }
 0x390   : > { %1568 = vrot.lane.b32.xlu1 %v4661_v35, %s4248_s28 }
 0x394   : > { %1572 = vrot.lane.b32.xlu1 %v4685_v57, %s4248_s28  ;;  %3396 = vmatmul.mubr.msk.bf16.vlgmr.msra.gmra.mrb[16].mxu0 %vm1197_vm2, %v4661_v35 }
 0x395   : > { %3399 = vmatprep.mubr.msk.bf16.mxu0 %vm1197_vm2, %v4673_v46 }
 0x39c   : > { %3400 = vmatmul.mubr.msk.bf16.gmra.mrb[20].mxu0 %vm1197_vm2, %v4685_v57 }
 0x3e6   : > { %v1579_v60 = vpop.permute.xlu0 %1578 }
 0x3e7   : > { %3656 = vmatprep.subr.msk.bf16.mxu0 %vm1197_vm2, %v1579_v60  ;;  %v1599_v61 = vsel %vm1197_vm2, %v1579_v60, 0 }
 0x3e8   : > { %3432 = vmatpush3.bf16.xpose.msra.mxu0 %v1599_v61 }
 0x3ee   : > { %v1581_v62 = vpop.permute.xlu0 %1580 }
 0x3ef   : > { %v1602_v63 = vsel %vm1197_vm2, %v1581_v62, 0  ;;  %3657 = vmatprep.subr.msk.bf16.mxu0 %vm1197_vm2, %v1581_v62 }
 0x3f0   : > { %3434 = vmatpush3.bf16.xpose.msra.mxu0 %v1602_v63 }
 0x3f2   : > { %v1567_v0 = vpop.permute.xlu0 %1566 }
 0x3f3   : > { %3439 = vmatprep.mubr.msk.bf16.mxu0 %vm1197_vm2, %v1567_v0 }
 0x3f6   : > { %v1583_v1 = vpop.permute.xlu1 %1582 }
 0x3f7   : > { %3658 = vmatprep.subr.msk.bf16.mxu0 %vm1197_vm2, %v1583_v1  ;;  %v1605_v3 = vsel %vm1197_vm2, %v1583_v1, 0  ;;  %v1571_v16 = vpop.permute.xlu0 %1570 }
 0x3f8   : > { %3436 = vmatpush3.bf16.xpose.msra.mxu0 %v1605_v3 }
 0x3fe   : > { %v1585_v7 = vpop.permute.xlu1 %1584 }
 0x3ff   : > { %v1608_v11 = vsel %vm1197_vm2, %v1585_v7, 0  ;;  %3659 = vmatprep.subr.msk.bf16.mxu0 %vm1197_vm2, %v1585_v7 }
 0x400   : > { %3438 = vmatpush3.bf16.xpose.msra.mxu0 %v1608_v11 }
 0x402   : > { %v1569_v14 = vpop.permute.xlu1 %1568 }
 0x406   : > { %v1573_v18 = vpop.permute.xlu1 %1572 }
 0x407   : > { %3440 = vmatmul.mubr.msk.bf16.vlgmr.msra.gmra.mrb[24].mxu0 %vm1197_vm2, %v1569_v14 }
 0x408   : > { %3443 = vmatprep.mubr.msk.bf16.mxu0 %vm1197_vm2, %v1571_v16 }
 0x40f   : > { %3444 = vmatmul.mubr.msk.bf16.gmra.mrb[28].mxu0 %vm1197_vm2, %v1573_v18 }
 0x451   : > { %v3381_v48 = vpop.f32.mrb[0].mxu1 }
 0x467   : > { %v3397_v21 = vpop.f32.mrb[16].mxu0 }
 0x468   : > { %v1256_v22 = vpop.f32.mrb[17].mxu0  ;;  %v1294_v29 = vsel %vm1287_vm3, %v3397_v21, -inf }
 0x469   : > { %v3398_v23 = vpop.f32.mrb[18].mxu0  ;;  %v1288_v26 = vsel %vm1287_vm3, %v1256_v22, -inf }
 0x46a   : > { %1289 = vmax.xlane.f32.xlu0 %v1288_v26  ;;  %v1259_v27 = vpop.f32.mrb[19].mxu0  ;;  %v1297_v5 = vsel %vm1287_vm3, %v3398_v23, -inf }
 0x46b   : > { %v1291_v28 = vsel %vm1287_vm3, %v1259_v27, -inf }
 0x46c   : > { %1292 = vmax.xlane.f32.xlu1 %v1291_v28 }
 0x46e   : > { %1295 = vmax.xlane.f32.xlu0 %v1294_v29 }
 0x46f   : > { %v3401_v30 = vpop.f32.mrb[20].mxu0 }
 0x470   : > { %v1272_v2 = vpop.f32.mrb[21].mxu0  ;;  %v1306_v33 = vsel %vm1287_vm3, %v3401_v30, -inf }
 0x471   : > { %v3402_v31 = vpop.f32.mrb[22].mxu0  ;;  %v1300_v8 = vsel %vm1287_vm3, %v1272_v2, -inf }
 0x472   : > { %1298 = vmax.xlane.f32.xlu0 %v1297_v5  ;;  %1301 = vmax.xlane.f32.xlu1 %v1300_v8  ;;  %v1275_v32 = vpop.f32.mrb[23].mxu0  ;;  %v1309_v37 = vsel %vm1287_vm3, %v3402_v31, -inf }
 0x473   : > { %v1303_v34 = vsel %vm1287_vm3, %v1275_v32, -inf }
 0x476   : > { %1307 = vmax.xlane.f32.xlu1 %v1306_v33  ;;  %1304 = vmax.xlane.f32.xlu0 %v1303_v34 }
 0x47a   : > { %1310 = vmax.xlane.f32.xlu0 %v1309_v37 }
 0x4da   : > { %v4736_v38 = vpop.f32.mrb[24].mxu0 }
 0x4db   : > { %v4738_v39 = vpop.f32.mrb[25].mxu0 }
 0x4dc   : > { %v4740_v40 = vpop.f32.mrb[26].mxu0 }
 0x4dd   : > { %v4742_v41 = vpop.f32.mrb[27].mxu0 }
 0x4e2   : > { %v4744_v42 = vpop.f32.mrb[28].mxu0 }
 0x4e3   : > { %v4746_v43 = vpop.f32.mrb[29].mxu0 }
 0x4e4   : > { %v4748_v44 = vpop.f32.mrb[30].mxu0 }
 0x4e5   : > { %v4750_v45 = vpop.f32.mrb[31].mxu0 }
 0x4f7   : > { %v1290_v49 = vpop.xlane.xlu0 %1289 }
 0x4f8   : > { %v1312_v50 = vsub.f32 %v1256_v22, %v1290_v49 }
 0x4f9   : > { %v1293_v51 = vpop.xlane.xlu1 %1292 }
 0x4fa   : > { %v1320_v52 = vmul.f32 1.442695, %v1312_v50  ;;  %v1313_v53 = vsub.f32 %v1259_v27, %v1293_v51  ;;  %v899_v27 = vsub.s32 2, %v4640_v10 }
 0x4fb   : > { %v1296_v54 = vpop.xlane.xlu0 %1295 }
 0x4fc   : > { %3888 = vpow2.f32 %v1320_v52  ;;  %v1322_v55 = vmul.f32 1.442695, %v1313_v53  ;;  %v1314_v56 = vsub.f32 %v3397_v21, %v1296_v54 }
 0x4fe   : > { %3890 = vpow2.f32 %v1322_v55  ;;  %v1324_v59 = vmul.f32 1.442695, %v1314_v56 }
 0x4ff   : > { %v1299_v60 = vpop.xlane.xlu0 %1298  ;;  %v1302_v61 = vpop.xlane.xlu1 %1301 }
 0x500   : > { %3892 = vpow2.f32 %v1324_v59  ;;  %v1315_v62 = vsub.f32 %v3398_v23, %v1299_v60  ;;  %v1316_v63 = vsub.f32 %v1272_v2, %v1302_v61 }
 0x502   : > { %v1326_v0 = vmul.f32 1.442695, %v1315_v62  ;;  %v1328_v1 = vmul.f32 1.442695, %v1316_v63 }
 0x503   : > { %v1308_v3 = vpop.xlane.xlu1 %1307  ;;  %v1305_v4 = vpop.xlane.xlu0 %1304 }
 0x504   : > { %3894 = vpow2.f32 %v1326_v0  ;;  %v1318_v6 = vsub.f32 %v3401_v30, %v1308_v3  ;;  %v1317_v7 = vsub.f32 %v1275_v32, %v1305_v4  ;;  %v1139_v32 = vpop.f32.mrb[1].mxu1  ;;  %v1675_v0 = vsel %vm1287_vm3, %v4738_v39, -inf }
 0x505   : > { %3896 = vpow2.f32 %v1328_v1  ;;  %v3382_v37 = vpop.f32.mrb[2].mxu1  ;;  %v1678_v1 = vsel %vm1287_vm3, %v4742_v41, -inf  ;;  %v1681_v3 = vsel %vm1287_vm3, %v4736_v38, -inf  ;;  %v1687_v4 = vsel %vm1287_vm3, %v4746_v43, -inf }
 0x506   : > { %v4752_v9 = vpop.eup %3888  ;;  %v1332_v11 = vmul.f32 1.442695, %v1318_v6  ;;  %v1330_v13 = vmul.f32 1.442695, %v1317_v7  ;;  %v1142_v50 = vpop.f32.mrb[3].mxu1  ;;  %v1684_v6 = vsel %vm1287_vm3, %v4740_v40, -inf }
 0x507   : > { %v1311_v14 = vpop.xlane.xlu0 %1310  ;;  %v1336_v15 = vsel %vm1287_vm3, %v4752_v9, 0.0  ;;  %v3385_v53 = vpop.f32.mrb[4].mxu1  ;;  %v1693_v7 = vsel %vm1287_vm3, %v4744_v42, -inf }
 0x508   : > { %v4756_v16 = vpop.eup %3890  ;;  %3898 = vpow2.f32 %v1332_v11  ;;  %v1319_v17 = vsub.f32 %v3402_v31, %v1311_v14  ;;  %1337 = vadd.xlane.f32.xlu1 %v1336_v15  ;;  %v900_v31 = vrot.slane %v4644_v12, %v899_v27  ;;  %v1690_v11 = vsel %vm1287_vm3, %v4750_v45, -inf }
 0x509   : > { %3900 = vpow2.f32 %v1330_v13  ;;  %v1339_v18 = vsel %vm1287_vm3, %v4756_v16, 0.0  ;;  %v1696_v13 = vsel %vm1287_vm3, %v4748_v44, -inf }
 0x50a   : > { %v4760_v19 = vpop.eup %3892  ;;  %v1334_v20 = vmul.f32 1.442695, %v1319_v17  ;;  %1340 = vadd.xlane.f32.xlu0 %v1339_v18  ;;  %v1148_v8 = vadd.f32 %v3381_v48, %v900_v31  ;;  %v1140_v34 = vadd.f32 %v1139_v32, %v900_v31  ;;  %v1151_v49 = vadd.f32 %v3382_v37, %v900_v31  ;;  %v1155_v48 = vpop.f32.mrb[5].mxu1 }
 0x50b   : > { %v1342_v21 = vsel %vm1287_vm3, %v4760_v19, 0.0  ;;  %v1143_v51 = vadd.f32 %v1142_v50, %v900_v31  ;;  %v3386_v54 = vpop.f32.mrb[6].mxu1  ;;  %v1156_v56 = vadd.f32 %v1155_v48, %v900_v31  ;;  %v1164_v61 = vadd.f32 %v3385_v53, %v900_v31 }
 0x50c   : > { %3902 = vpow2.f32 %v1334_v20  ;;  %1343 = vadd.xlane.f32.xlu1 %v1342_v21  ;;  %v4786_v52 = vpack.c.bf16 %v1151_v49, %v1148_v8  ;;  %v1158_v55 = vpop.f32.mrb[7].mxu1  ;;  %v1167_v62 = vadd.f32 %v3386_v54, %v900_v31 }
 0x50d   : > { %v4788_v12 = vpack.c.bf16 %v1143_v51, %v1140_v34  ;;  %v1159_v59 = vadd.f32 %v1158_v55, %v900_v31 }
 0x50e   : > { %v4764_v22 = vpop.eup %3894  ;;  %v4800_v63 = vpack.c.bf16 %v1167_v62, %v1164_v61 }
 0x50f   : > { %v4766_v23 = vpop.eup %3896  ;;  %v1345_v26 = vsel %vm1287_vm3, %v4764_v22, 0.0  ;;  %3403 = vmatprep.subr.bf16.mxu1 %v4788_v12  ;;  %v4794_v60 = vpack.c.bf16 %v1159_v59, %v1156_v56  ;;  %v3872_v59 = vld [vmem:[%s4579_s3] sm:$0xff]  }
 0x510   : > { %v1348_v28 = vsel %vm1287_vm3, %v4766_v23, 0.0  ;;  %1346 = vadd.xlane.f32.xlu0 %v1345_v26  ;;  %3404 = vmatpush3.bf16.msra.mxu1 %v4788_v12 }
 0x511   : > { %1349 = vadd.xlane.f32.xlu1 %v1348_v28  ;;  %3405 = vmatprep.subr.bf16.mxu1 %v4786_v52 }
 0x512   : > { %v4773_v29 = vpop.eup %3898 }
 0x513   : > { %v4775_v30 = vpop.eup %3900  ;;  %v1354_v2 = vsel %vm1287_vm3, %v4773_v29, 0.0 }
 0x514   : > { %v1351_v5 = vsel %vm1287_vm3, %v4775_v30, 0.0  ;;  %3406 = vmatpush3.bf16.msra.mxu1 %v4786_v52 }
 0x515   : > { %1355 = vadd.xlane.f32.xlu1 %v1354_v2  ;;  %1352 = vadd.xlane.f32.xlu0 %v1351_v5 }
 0x516   : > { %v4782_v10 = vpop.eup %3902  ;;  %3407 = vmatprep.subr.bf16.mxu1 %v4794_v60 }
 0x517   : > { %v1357_v33 = vsel %vm1287_vm3, %v4782_v10, 0.0 }
 0x518   : > { %3408 = vmatpush3.bf16.msra.mxu1 %v4794_v60 }
 0x519   : > { %1358 = vadd.xlane.f32.xlu0 %v1357_v33  ;;  %3409 = vmatprep.subr.bf16.mxu1 %v4800_v63 }
 0x51c   : > { %3410 = vmatpush3.bf16.msra.mxu1 %v4800_v63 }
 0x51d   : > { %3419 = vmatprep.subr.bf16.mxu1 %v3872_v59 }
 0x526   : > { %1973 = vrot.lane.b32.xlu1 %v4651_v25, %s4249_s26 }
 0x52a   : > { %1977 = vrot.lane.b32.xlu1 %v4675_v47, %s4249_s26 }
 0x52e   : > { %1979 = vrot.lane.b32.xlu1 %v4687_v58, %s4249_s26 }
 0x52f   : > { %1975 = vrot.lane.b32.xlu0 %v4663_v36, %s4249_s26 }
 0x532   : > { %1967 = vrot.lane.b32.xlu1 %v4661_v35, %s4249_s26 }
 0x533   : > { %1965 = vrot.lane.b32.xlu0 %v4649_v24, %s4249_s26 }
 0x536   : > { %1971 = vrot.lane.b32.xlu1 %v4685_v57, %s4249_s26 }
 0x537   : > { %1969 = vrot.lane.b32.xlu0 %v4673_v46, %s4249_s26 }
 0x556   : > { %1676 = vmax.xlane.f32.xlu0 %v1675_v0 }
 0x55a   : > { %1679 = vmax.xlane.f32.xlu1 %v1678_v1  ;;  %1682 = vmax.xlane.f32.xlu0 %v1681_v3 }
 0x55e   : > { %1688 = vmax.xlane.f32.xlu1 %v1687_v4  ;;  %1685 = vmax.xlane.f32.xlu0 %v1684_v6 }
 0x562   : > { %1694 = vmax.xlane.f32.xlu1 %v1693_v7  ;;  %1691 = vmax.xlane.f32.xlu0 %v1690_v11 }
 0x566   : > { %1697 = vmax.xlane.f32.xlu0 %v1696_v13 }
 0x573   : > { %1771 = vrot.lane.b32.xlu1 %v4788_v12, %s4248_s28 }
 0x595   : > { %v1338_v14 = vpop.xlane.xlu1 %1337 }
 0x596   : > { %3904 = vrcp.f32 %v1338_v14 }
 0x597   : > { %v1341_v15 = vpop.xlane.xlu0 %1340 }
 0x598   : > { %3906 = vrcp.f32 %v1341_v15 }
 0x599   : > { %v1344_v17 = vpop.xlane.xlu1 %1343 }
 0x59a   : > { %3908 = vrcp.f32 %v1344_v17 }
 0x59d   : > { %v1347_v18 = vpop.xlane.xlu0 %1346 }
 0x59e   : > { %v1350_v20 = vpop.xlane.xlu1 %1349  ;;  %3910 = vrcp.f32 %v1347_v18 }
 0x59f   : > { %3912 = vrcp.f32 %v1350_v20 }
 0x5a0   : > { %v3905_v21 = vpop.eup %3904 }
 0x5a1   : > { %v1368_v2 = vmul.f32 %v3905_v21, %v4752_v9 }
 0x5a2   : > { %v3907_v26 = vpop.eup %3906  ;;  %v1356_v27 = vpop.xlane.xlu1 %1355 }
 0x5a3   : > { %v1353_v28 = vpop.xlane.xlu0 %1352  ;;  %v1369_v31 = vmul.f32 %v3907_v26, %v4756_v16 }
 0x5a4   : > { %3914 = vrcp.f32 %v1353_v28  ;;  %v3909_v8 = vpop.eup %3908 }
 0x5a5   : > { %3916 = vrcp.f32 %v1356_v27  ;;  %v1376_v5 = vpack.c.bf16 %v1369_v31, %v1368_v2  ;;  %v1370_v9 = vmul.f32 %v3909_v8, %v4760_v19 }
 0x5a6   : > { %v1974_v32 = vpop.permute.xlu1 %1973 }
 0x5a7   : > { %v1359_v33 = vpop.xlane.xlu0 %1358  ;;  %v1994_v34 = vsel %vm1197_vm2, %v1974_v32, 0  ;;  %3660 = vmatprep.subr.msk.bf16.mxu0 %vm1197_vm2, %v1974_v32  ;;  %3411 = vmatprep.mubr.msk.bf16.mxu1 %vm1287_vm3, %v1376_v5 }
 0x5a8   : > { %3918 = vrcp.f32 %v1359_v33  ;;  %v3911_v37 = vpop.eup %3910  ;;  %3476 = vmatpush3.bf16.xpose.msra.mxu0 %v1994_v34 }
 0x5a9   : > { %v1371_v16 = vmul.f32 %v3911_v37, %v4764_v22  ;;  %v3913_v51 = vpop.eup %3912  ;;  %v3873_v22 = vld [vmem:[%s4579_s3 + $0x8] sm:$0xff]  }
 0x5aa   : > { %v1372_v56 = vmul.f32 %v3913_v51, %v4766_v23  ;;  %v1978_v61 = vpop.permute.xlu1 %1977 }
 0x5ab   : > { %v1976_v49 = vpop.permute.xlu0 %1975  ;;  %v1377_v50 = vpack.c.bf16 %v1371_v16, %v1370_v9 }
 0x5ac   : > { %3661 = vmatprep.subr.msk.bf16.mxu0 %vm1197_vm2, %v1976_v49  ;;  %v1997_v55 = vsel %vm1197_vm2, %v1976_v49, 0 }
 0x5ad   : > { %3412 = vmatmul.mubr.msk.bf16.vlgmr.msra.gmra.mrb[8].mxu1 %vm1287_vm3, %v1377_v50 }
 0x5ae   : > { %v3915_v53 = vpop.eup %3914  ;;  %3420 = vmatpush3.bf16.msra.mxu1 %v3872_v59  ;;  %v1980_v4 = vpop.permute.xlu1 %1979 }
 0x5af   : > { %v1966_v48 = vpop.permute.xlu0 %1965  ;;  %v3917_v54 = vpop.eup %3916  ;;  %v1373_v19 = vmul.f32 %v3915_v53, %v4775_v30  ;;  %3421 = vmatprep.subr.bf16.mxu1 %v3873_v22  ;;  %v2000_v30 = vsel %vm1197_vm2, %v1978_v61, 0  ;;  %v2003_v6 = vsel %vm1197_vm2, %v1980_v4, 0 }
 0x5b0   : > { %3483 = vmatprep.mubr.msk.bf16.mxu0 %vm1197_vm2, %v1966_v48  ;;  %3478 = vmatpush3.bf16.xpose.msra.mxu0 %v1997_v55  ;;  %v1374_v1 = vmul.f32 %v3917_v54, %v4773_v29 }
 0x5b1   : > { %3662 = vmatprep.subr.msk.bf16.mxu0 %vm1197_vm2, %v1978_v61  ;;  %v1378_v0 = vpack.c.bf16 %v1373_v19, %v1372_v56 }
 0x5b2   : > { %v3919_v62 = vpop.eup %3918  ;;  %3422 = vmatpush3.bf16.msra.mxu1 %v3873_v22  ;;  %v1968_v29 = vpop.permute.xlu1 %1967 }
 0x5b3   : > { %v1375_v3 = vmul.f32 %v3919_v62, %v4782_v10  ;;  %3415 = vmatprep.mubr.msk.bf16.mxu1 %vm1287_vm3, %v1378_v0  ;;  %v1970_v7 = vpop.permute.xlu0 %1969 }
 0x5b5   : > { %v1379_v23 = vpack.c.bf16 %v1375_v3, %v1374_v1 }
 0x5b6   : > { %v1972_v10 = vpop.permute.xlu1 %1971 }
 0x5b7   : > { %3416 = vmatmul.mubr.msk.bf16.gmra.mrb[12].mxu1 %vm1287_vm3, %v1379_v23 }
 0x5b8   : > { %3480 = vmatpush3.bf16.xpose.msra.mxu0 %v2000_v30 }
 0x5b9   : > { %3663 = vmatprep.subr.msk.bf16.mxu0 %vm1197_vm2, %v1980_v4 }
 0x5c0   : > { %3482 = vmatpush3.bf16.xpose.msra.mxu0 %v2003_v6 }
 0x5c7   : > { %3484 = vmatmul.mubr.msk.bf16.vlgmr.msra.gmra.mrb[32].mxu0 %vm1197_vm2, %v1968_v29 }
 0x5c8   : > { %3487 = vmatprep.mubr.msk.bf16.mxu0 %vm1197_vm2, %v1970_v7 }
 0x5cf   : > { %3488 = vmatmul.mubr.msk.bf16.gmra.mrb[36].mxu0 %vm1197_vm2, %v1972_v10 }
 0x5e3   : > { %v1677_v11 = vpop.xlane.xlu0 %1676 }
 0x5e4   : > { %v1699_v13 = vsub.f32 %v4738_v39, %v1677_v11 }
 0x5e6   : > { %v1707_v20 = vmul.f32 1.442695, %v1699_v13 }
 0x5e7   : > { %v1680_v14 = vpop.xlane.xlu1 %1679  ;;  %v1683_v15 = vpop.xlane.xlu0 %1682 }
 0x5e8   : > { %v1701_v17 = vsub.f32 %v4736_v38, %v1683_v15  ;;  %v1700_v21 = vsub.f32 %v4742_v41, %v1680_v14 }
 0x5ea   : > { %v1711_v18 = vmul.f32 1.442695, %v1701_v17  ;;  %v1709_v31 = vmul.f32 1.442695, %v1700_v21 }
 0x5eb   : > { %v1689_v26 = vpop.xlane.xlu1 %1688  ;;  %v1686_v27 = vpop.xlane.xlu0 %1685 }
 0x5ec   : > { %v1702_v28 = vsub.f32 %v4740_v40, %v1686_v27  ;;  %3920 = vpow2.f32 %v1711_v18  ;;  %v1703_v5 = vsub.f32 %v4746_v43, %v1689_v26 }
 0x5ed   : > { %3922 = vpow2.f32 %v1707_v20 }
 0x5ee   : > { %v1713_v2 = vmul.f32 1.442695, %v1702_v28  ;;  %v1715_v33 = vmul.f32 1.442695, %v1703_v5 }
 0x5ef   : > { %v1695_v8 = vpop.xlane.xlu1 %1694  ;;  %v1692_v39 = vpop.xlane.xlu0 %1691 }
 0x5f0   : > { %v1705_v32 = vsub.f32 %v4744_v42, %v1695_v8  ;;  %3924 = vpow2.f32 %v1713_v2  ;;  %v1704_v41 = vsub.f32 %v4750_v45, %v1692_v39 }
 0x5f1   : > { %3926 = vpow2.f32 %v1709_v31 }
 0x5f2   : > { %v1719_v38 = vmul.f32 1.442695, %v1705_v32  ;;  %v1717_v43 = vmul.f32 1.442695, %v1704_v41 }
 0x5f3   : > { %v1698_v34 = vpop.xlane.xlu0 %1697  ;;  %v1772_v37 = vpop.permute.xlu1 %1771 }
 0x5f4   : > { %3928 = vpow2.f32 %v1719_v38  ;;  %v1706_v40 = vsub.f32 %v4748_v44, %v1698_v34  ;;  %3447 = vmatprep.subr.bf16.mxu1 %v1772_v37 }
 0x5f5   : > { %3930 = vpow2.f32 %v1715_v33 }
 0x5f6   : > { %v1721_v9 = vmul.f32 1.442695, %v1706_v40  ;;  %v4870_v16 = vpop.eup %3920 }
 0x5f7   : > { %v1729_v42 = vsel %vm1287_vm3, %v4870_v16, 0.0  ;;  %v4874_v49 = vpop.eup %3922 }
 0x5f8   : > { %3932 = vpow2.f32 %v1721_v9  ;;  %1730 = vadd.xlane.f32.xlu1 %v1729_v42  ;;  %v1723_v45 = vsel %vm1287_vm3, %v4874_v49, 0.0 }
 0x5f9   : > { %3934 = vpow2.f32 %v1717_v43 }
 0x5fa   : > { %v4876_v50 = vpop.eup %3924 }
 0x5fb   : > { %v1732_v44 = vsel %vm1287_vm3, %v4876_v50, 0.0  ;;  %v4882_v51 = vpop.eup %3926 }
 0x5fc   : > { %1724 = vadd.xlane.f32.xlu1 %v1723_v45  ;;  %1733 = vadd.xlane.f32.xlu0 %v1732_v44  ;;  %v1726_v54 = vsel %vm1287_vm3, %v4882_v51, 0.0 }
 0x5fe   : > { %v4884_v53 = vpop.eup %3928 }
 0x5ff   : > { %v1741_v48 = vsel %vm1287_vm3, %v4884_v53, 0.0  ;;  %v4890_v55 = vpop.eup %3930 }
 0x600   : > { %1742 = vadd.xlane.f32.xlu1 %v1741_v48  ;;  %1727 = vadd.xlane.f32.xlu0 %v1726_v54  ;;  %v1735_v59 = vsel %vm1287_vm3, %v4890_v55, 0.0 }
 0x602   : > { %v4892_v56 = vpop.eup %3932 }
 0x603   : > { %v1744_v19 = vsel %vm1287_vm3, %v4892_v56, 0.0  ;;  %v4898_v22 = vpop.eup %3934 }
 0x604   : > { %1736 = vadd.xlane.f32.xlu1 %v1735_v59  ;;  %1745 = vadd.xlane.f32.xlu0 %v1744_v19  ;;  %v1738_v61 = vsel %vm1287_vm3, %v4898_v22, 0.0 }
 0x608   : > { %1739 = vadd.xlane.f32.xlu0 %v1738_v61 }
 0x615   : > { %1775 = vrot.lane.b32.xlu1 %v4794_v60, %s4248_s28 }
 0x619   : > { %1777 = vrot.lane.b32.xlu1 %v4800_v63, %s4248_s28 }
 0x61d   : > { %2366 = vrot.lane.b32.xlu1 %v4663_v36, %s4250_s30 }
 0x61e   : > { %1773 = vrot.lane.b32.xlu0 %v4786_v52, %s4248_s28 }
 0x621   : > { %2370 = vrot.lane.b32.xlu1 %v4687_v58, %s4250_s30 }
 0x622   : > { %2364 = vrot.lane.b32.xlu0 %v4651_v25, %s4250_s30 }
 0x625   : > { %2358 = vrot.lane.b32.xlu1 %v4661_v35, %s4250_s30 }
 0x626   : > { %2368 = vrot.lane.b32.xlu0 %v4675_v47, %s4250_s30 }
 0x629   : > { %2362 = vrot.lane.b32.xlu1 %v4685_v57, %s4250_s30 }
 0x62a   : > { %2356 = vrot.lane.b32.xlu0 %v4649_v24, %s4250_s30 }
 0x62e   : > { %2360 = vrot.lane.b32.xlu0 %v4673_v46, %s4250_s30 }
 0x680   : > { %v3413_v36 = vpop.f32.mrb[8].mxu1 }
 0x681   : > { %v1426_v58 = vpop.f32.mrb[9].mxu1 }
 0x682   : > { %v3414_v62 = vpop.f32.mrb[10].mxu1 }
 0x683   : > { %v1458_v0 = vpack.c.bf16 %v3414_v62, %v3413_v36  ;;  %v1429_v25 = vpop.f32.mrb[11].mxu1 }
 0x684   : > { %v1457_v1 = vpack.c.bf16 %v1429_v25, %v1426_v58 }
 0x685   : > { %v1731_v3 = vpop.xlane.xlu1 %1730 }
 0x686   : > { %3423 = vmatprep.mubr.msk.bf16.mxu1 %vm1197_vm2, %v1457_v1 }
 0x687   : > { %3424 = vmatmul.mubr.msk.bf16.vlgmr.msra.gmra.mrb[16].mxu1 %vm1197_vm2, %v1458_v0 }
 0x688   : > { %3448 = vmatpush3.bf16.msra.mxu1 %v1772_v37 }
 0x689   : > { %v1725_v47 = vpop.xlane.xlu1 %1724  ;;  %v1734_v57 = vpop.xlane.xlu0 %1733 }
 0x68a   : > { %v3417_v35 = vpop.f32.mrb[12].mxu1  ;;  %3936 = vrcp.f32 %v1725_v47 }
 0x68b   : > { %v1442_v23 = vpop.f32.mrb[13].mxu1 }
 0x68c   : > { %v3418_v24 = vpop.f32.mrb[14].mxu1 }
 0x68d   : > { %v1460_v30 = vpack.c.bf16 %v3418_v24, %v3417_v35  ;;  %v1445_v4 = vpop.f32.mrb[15].mxu1  ;;  %v1743_v6 = vpop.xlane.xlu1 %1742 }
 0x68e   : > { %v1459_v46 = vpack.c.bf16 %v1445_v4, %v1442_v23  ;;  %v1728_v29 = vpop.xlane.xlu0 %1727 }
 0x68f   : > { %3938 = vrcp.f32 %v1728_v29 }
 0x690   : > { %3427 = vmatprep.mubr.msk.bf16.mxu1 %vm1197_vm2, %v1459_v46  ;;  %3940 = vrcp.f32 %v1734_v57  ;;  %v3874_v57 = vld [vmem:[%s4579_s3 + $0x10] sm:$0xff]  }
 0x691   : > { %3428 = vmatmul.mubr.msk.bf16.gmra.mrb[20].mxu1 %vm1197_vm2, %v1460_v30  ;;  %v1737_v7 = vpop.xlane.xlu1 %1736  ;;  %3942 = vrcp.f32 %v1731_v3 }
 0x692   : > { %v1746_v10 = vpop.xlane.xlu0 %1745 }
 0x694   : > { %v3937_v14 = vpop.eup %3936 }
 0x695   : > { %v1776_v11 = vpop.permute.xlu1 %1775  ;;  %v1755_v21 = vmul.f32 %v3937_v14, %v4874_v49 }
 0x696   : > { %v1740_v13 = vpop.xlane.xlu0 %1739 }
 0x697   : > { %3944 = vrcp.f32 %v1740_v13 }
 0x698   : > { %3946 = vrcp.f32 %v1737_v7 }
 0x699   : > { %v3939_v15 = vpop.eup %3938  ;;  %v1778_v18 = vpop.permute.xlu1 %1777  ;;  %3948 = vrcp.f32 %v1746_v10 }
 0x69a   : > { %v1774_v17 = vpop.permute.xlu0 %1773  ;;  %v4928_v20 = vpop.f32.mrb[32].mxu0  ;;  %v1756_v26 = vmul.f32 %v3939_v15, %v4882_v51  ;;  %3950 = vrcp.f32 %v1743_v6 }
 0x69b   : > { %3449 = vmatprep.subr.bf16.mxu1 %v1774_v17  ;;  %v4932_v27 = vpop.f32.mrb[33].mxu0  ;;  %v3941_v8 = vpop.eup %3940  ;;  %v2076_v9 = vsel %vm1287_vm3, %v4928_v20, -inf }
 0x69c   : > { %3450 = vmatpush3.bf16.msra.mxu1 %v1774_v17  ;;  %v4934_v28 = vpop.f32.mrb[34].mxu0  ;;  %v2070_v2 = vsel %vm1287_vm3, %v4932_v27, -inf  ;;  %v1763_v31 = vpack.c.bf16 %v1756_v26, %v1755_v21  ;;  %v3943_v38 = vpop.eup %3942  ;;  %v1758_v40 = vmul.f32 %v3941_v8, %v4876_v50 }
 0x69d   : > { %3451 = vmatprep.subr.bf16.mxu1 %v1776_v11  ;;  %v4938_v5 = vpop.f32.mrb[35].mxu0  ;;  %2071 = vmax.xlane.f32.xlu0 %v2070_v2  ;;  %v2367_v34 = vpop.permute.xlu1 %2366  ;;  %v1757_v44 = vmul.f32 %v3943_v38, %v4870_v16  ;;  %v2079_v59 = vsel %vm1287_vm3, %v4934_v28, -inf }
 0x69e   : > { %3455 = vmatprep.mubr.msk.bf16.mxu1 %vm1287_vm3, %v1763_v31  ;;  %v2365_v39 = vpop.permute.xlu0 %2364  ;;  %v2073_v32 = vsel %vm1287_vm3, %v4938_v5, -inf  ;;  %v2388_v16 = vsel %vm1197_vm2, %v2367_v34, 0 }
 0x69f   : > { %v2385_v33 = vsel %vm1197_vm2, %v2365_v39, 0  ;;  %3664 = vmatprep.subr.msk.bf16.mxu0 %vm1197_vm2, %v2365_v39  ;;  %2074 = vmax.xlane.f32.xlu1 %v2073_v32  ;;  %v1764_v19 = vpack.c.bf16 %v1758_v40, %v1757_v44 }
 0x6a0   : > { %3452 = vmatpush3.bf16.msra.mxu1 %v1776_v11  ;;  %3520 = vmatpush3.bf16.xpose.msra.mxu0 %v2385_v33 }
 0x6a1   : > { %v3945_v41 = vpop.eup %3944  ;;  %3453 = vmatprep.subr.bf16.mxu1 %v1778_v18  ;;  %3665 = vmatprep.subr.msk.bf16.mxu0 %vm1197_vm2, %v2367_v34  ;;  %v2371_v47 = vpop.permute.xlu1 %2370 }
 0x6a2   : > { %v3947_v37 = vpop.eup %3946  ;;  %v4949_v43 = vpop.f32.mrb[36].mxu0  ;;  %2077 = vmax.xlane.f32.xlu0 %v2076_v9  ;;  %v1760_v45 = vmul.f32 %v3945_v41, %v4898_v22 }
 0x6a3   : > { %v2369_v42 = vpop.permute.xlu0 %2368  ;;  %v4951_v49 = vpop.f32.mrb[37].mxu0  ;;  %v1759_v54 = vmul.f32 %v3947_v37, %v4890_v55  ;;  %v2088_v55 = vsel %vm1287_vm3, %v4949_v43, -inf }
 0x6a4   : > { %v4955_v51 = vpop.f32.mrb[38].mxu0  ;;  %v2082_v50 = vsel %vm1287_vm3, %v4951_v49, -inf  ;;  %3454 = vmatpush3.bf16.msra.mxu1 %v1778_v18  ;;  %v3949_v61 = vpop.eup %3948  ;;  %v2391_v35 = vsel %vm1197_vm2, %v2369_v42, 0 }
 0x6a5   : > { %v4959_v48 = vpop.f32.mrb[39].mxu0  ;;  %2083 = vmax.xlane.f32.xlu1 %v2082_v50  ;;  %v1765_v36 = vpack.c.bf16 %v1760_v45, %v1759_v54  ;;  %v3951_v58 = vpop.eup %3950  ;;  %v1762_v0 = vmul.f32 %v3949_v61, %v4892_v56  ;;  %v2091_v1 = vsel %vm1287_vm3, %v4955_v51, -inf  ;;  %3463 = vmatprep.subr.bf16.mxu1 %v3874_v57  ;;  %v2394_v56 = vsel %vm1197_vm2, %v2371_v47, 0 }
 0x6a6   : > { %2080 = vmax.xlane.f32.xlu0 %v2079_v59  ;;  %v2085_v62 = vsel %vm1287_vm3, %v4959_v48, -inf  ;;  %v1761_v25 = vmul.f32 %v3951_v58, %v4884_v53  ;;  %v3875_v53 = vld [vmem:[%s4579_s3 + $0x18] sm:$0xff]   ;;  %v2359_v23 = vpop.permute.xlu1 %2358 }
 0x6a7   : > { %v2357_v22 = vpop.permute.xlu0 %2356  ;;  %3456 = vmatmul.mubr.msk.bf16.vlgmr.msra.gmra.mrb[24].mxu1 %vm1287_vm3, %v1764_v19 }
 0x6a8   : > { %3527 = vmatprep.mubr.msk.bf16.mxu0 %vm1197_vm2, %v2357_v22  ;;  %3459 = vmatprep.mubr.msk.bf16.mxu1 %vm1287_vm3, %v1765_v36  ;;  %v1766_v3 = vpack.c.bf16 %v1762_v0, %v1761_v25 }
 0x6a9   : > { %3522 = vmatpush3.bf16.xpose.msra.mxu0 %v2388_v16  ;;  %2089 = vmax.xlane.f32.xlu1 %v2088_v55 }
 0x6aa   : > { %3666 = vmatprep.subr.msk.bf16.mxu0 %vm1197_vm2, %v2369_v42  ;;  %2086 = vmax.xlane.f32.xlu0 %v2085_v62  ;;  %v2363_v30 = vpop.permute.xlu1 %2362 }
 0x6ab   : > { %3464 = vmatpush3.bf16.msra.mxu1 %v3874_v57  ;;  %v2361_v24 = vpop.permute.xlu0 %2360 }
 0x6ac   : > { %3465 = vmatprep.subr.bf16.mxu1 %v3875_v53 }
 0x6ae   : > { %2092 = vmax.xlane.f32.xlu0 %v2091_v1 }
 0x6af   : > { %3460 = vmatmul.mubr.msk.bf16.gmra.mrb[28].mxu1 %vm1287_vm3, %v1766_v3 }
 0x6b0   : > { %3466 = vmatpush3.bf16.msra.mxu1 %v3875_v53 }
 0x6b1   : > { %3524 = vmatpush3.bf16.xpose.msra.mxu0 %v2391_v35 }
 0x6b2   : > { %3667 = vmatprep.subr.msk.bf16.mxu0 %vm1197_vm2, %v2371_v47 }
 0x6b9   : > { %3526 = vmatpush3.bf16.xpose.msra.mxu0 %v2394_v56 }
 0x6ba   : > { %2162 = vrot.lane.b32.xlu1 %v4788_v12, %s4249_s26 }
 0x6c0   : > { %3528 = vmatmul.mubr.msk.bf16.vlgmr.msra.gmra.mrb[40].mxu0 %vm1197_vm2, %v2359_v23 }
 0x6c1   : > { %3531 = vmatprep.mubr.msk.bf16.mxu0 %vm1197_vm2, %v2361_v24 }
 0x6c8   : > { %3532 = vmatmul.mubr.msk.bf16.gmra.mrb[44].mxu0 %vm1197_vm2, %v2363_v30 }
 0x72a   : > { %v2072_v4 = vpop.xlane.xlu0 %2071 }
 0x72b   : > { %v2094_v6 = vsub.f32 %v4932_v27, %v2072_v4 }
 0x72c   : > { %v2075_v46 = vpop.xlane.xlu1 %2074 }
 0x72d   : > { %v2102_v11 = vmul.f32 1.442695, %v2094_v6  ;;  %v2095_v13 = vsub.f32 %v4938_v5, %v2075_v46 }
 0x72f   : > { %v2078_v29 = vpop.xlane.xlu0 %2077  ;;  %v2104_v18 = vmul.f32 1.442695, %v2095_v13 }
 0x730   : > { %v2096_v7 = vsub.f32 %v4928_v20, %v2078_v29 }
 0x732   : > { %v2084_v10 = vpop.xlane.xlu1 %2083  ;;  %v2106_v14 = vmul.f32 1.442695, %v2096_v7 }
 0x733   : > { %v2081_v15 = vpop.xlane.xlu0 %2080  ;;  %v2098_v21 = vsub.f32 %v4951_v49, %v2084_v10 }
 0x734   : > { %3952 = vpow2.f32 %v2106_v14  ;;  %v2097_v17 = vsub.f32 %v4934_v28, %v2081_v15 }
 0x735   : > { %3954 = vpow2.f32 %v2102_v11  ;;  %v2110_v8 = vmul.f32 1.442695, %v2098_v21 }
 0x736   : > { %v2108_v26 = vmul.f32 1.442695, %v2097_v17  ;;  %v2090_v2 = vpop.xlane.xlu1 %2089 }
 0x737   : > { %v2100_v27 = vsub.f32 %v4949_v43, %v2090_v2  ;;  %v2087_v31 = vpop.xlane.xlu0 %2086 }
 0x738   : > { %3956 = vpow2.f32 %v2108_v26  ;;  %v2099_v5 = vsub.f32 %v4959_v48, %v2087_v31 }
 0x739   : > { %v2114_v20 = vmul.f32 1.442695, %v2100_v27  ;;  %3958 = vpow2.f32 %v2104_v18 }
 0x73a   : > { %v2163_v39 = vpop.permute.xlu1 %2162  ;;  %v2112_v33 = vmul.f32 1.442695, %v2099_v5 }
 0x73b   : > { %3960 = vpow2.f32 %v2114_v20  ;;  %v2093_v32 = vpop.xlane.xlu0 %2092  ;;  %3491 = vmatprep.subr.bf16.mxu1 %v2163_v39 }
 0x73c   : > { %v2101_v28 = vsub.f32 %v4955_v51, %v2093_v32  ;;  %3962 = vpow2.f32 %v2110_v8 }
 0x73e   : > { %v4996_v38 = vpop.eup %3952  ;;  %v2116_v41 = vmul.f32 1.442695, %v2101_v28 }
 0x73f   : > { %v2124_v34 = vsel %vm1287_vm3, %v4996_v38, 0.0  ;;  %v5000_v37 = vpop.eup %3954 }
 0x740   : > { %3964 = vpow2.f32 %v2116_v41  ;;  %2125 = vadd.xlane.f32.xlu1 %v2124_v34  ;;  %v2118_v9 = vsel %vm1287_vm3, %v5000_v37, 0.0 }
 0x741   : > { %3966 = vpow2.f32 %v2112_v33 }
 0x742   : > { %v5002_v40 = vpop.eup %3956 }
 0x743   : > { %v2127_v43 = vsel %vm1287_vm3, %v5002_v40, 0.0  ;;  %v5008_v42 = vpop.eup %3958 }
 0x744   : > { %2119 = vadd.xlane.f32.xlu1 %v2118_v9  ;;  %2128 = vadd.xlane.f32.xlu0 %v2127_v43  ;;  %v2121_v44 = vsel %vm1287_vm3, %v5008_v42, 0.0 }
 0x745   : > { %v5010_v49 = vpop.eup %3960 }
 0x746   : > { %v2136_v45 = vsel %vm1287_vm3, %v5010_v49, 0.0  ;;  %v5016_v51 = vpop.eup %3962 }
 0x747   : > { %v2130_v48 = vsel %vm1287_vm3, %v5016_v51, 0.0 }
 0x748   : > { %2137 = vadd.xlane.f32.xlu1 %v2136_v45  ;;  %2122 = vadd.xlane.f32.xlu0 %v2121_v44 }
 0x74a   : > { %v5018_v50 = vpop.eup %3964 }
 0x74b   : > { %v2139_v54 = vsel %vm1287_vm3, %v5018_v50, 0.0  ;;  %v5024_v19 = vpop.eup %3966 }
 0x74c   : > { %2131 = vadd.xlane.f32.xlu1 %v2130_v48  ;;  %2140 = vadd.xlane.f32.xlu0 %v2139_v54  ;;  %v2133_v59 = vsel %vm1287_vm3, %v5024_v19, 0.0 }
 0x750   : > { %2134 = vadd.xlane.f32.xlu0 %v2133_v59  ;;  %v3877_v59 = vld [vmem:[%s4579_s3 + $0x28] sm:$0xff]  }
 0x75d   : > { %2166 = vrot.lane.b32.xlu1 %v4794_v60, %s4249_s26 }
 0x761   : > { %2168 = vrot.lane.b32.xlu1 %v4800_v63, %s4249_s26 }
 0x766   : > { %2164 = vrot.lane.b32.xlu0 %v4786_v52, %s4249_s26 }
 0x77a   : > { %v3457_v61 = vpop.f32.mrb[24].mxu1 }
 0x77b   : > { %v1829_v22 = vpop.f32.mrb[25].mxu1 }
 0x77c   : > { %v3458_v36 = vpop.f32.mrb[26].mxu1 }
 0x77d   : > { %v1861_v16 = vpack.c.bf16 %v3458_v36, %v3457_v61  ;;  %v1832_v58 = vpop.f32.mrb[27].mxu1 }
 0x77e   : > { %v1860_v55 = vpack.c.bf16 %v1832_v58, %v1829_v22 }
 0x780   : > { %3467 = vmatprep.mubr.msk.bf16.mxu1 %vm1197_vm2, %v1860_v55 }
 0x781   : > { %3468 = vmatmul.mubr.msk.bf16.vlgmr.msra.gmra.mrb[16].mxu1 %vm1197_vm2, %v1861_v16 }
 0x782   : > { %3492 = vmatpush3.bf16.msra.mxu1 %v2163_v39  ;;  %v3461_v62 = vpop.f32.mrb[28].mxu1 }
 0x783   : > { %v1845_v0 = vpop.f32.mrb[29].mxu1 }
 0x784   : > { %v3462_v25 = vpop.f32.mrb[30].mxu1 }
 0x785   : > { %v1863_v1 = vpack.c.bf16 %v3462_v25, %v3461_v62  ;;  %v1848_v3 = vpop.f32.mrb[31].mxu1 }
 0x786   : > { %v1862_v35 = vpack.c.bf16 %v1848_v3, %v1845_v0 }
 0x788   : > { %3471 = vmatprep.mubr.msk.bf16.mxu1 %vm1197_vm2, %v1862_v35 }
 0x789   : > { %3472 = vmatmul.mubr.msk.bf16.gmra.mrb[20].mxu1 %vm1197_vm2, %v1863_v1 }
 0x793   : > { %v5038_v47 = vpop.f32.mrb[40].mxu0 }
 0x794   : > { %v5040_v57 = vpop.f32.mrb[41].mxu0  ;;  %v2467_v30 = vsel %vm1287_vm3, %v5038_v47, -inf }
 0x795   : > { %v5042_v56 = vpop.f32.mrb[42].mxu0  ;;  %v2461_v53 = vsel %vm1287_vm3, %v5040_v57, -inf }
 0x796   : > { %v5046_v23 = vpop.f32.mrb[43].mxu0  ;;  %2462 = vmax.xlane.f32.xlu0 %v2461_v53  ;;  %v2470_v7 = vsel %vm1287_vm3, %v5042_v56, -inf }
 0x797   : > { %v2464_v24 = vsel %vm1287_vm3, %v5046_v23, -inf }
 0x798   : > { %2465 = vmax.xlane.f32.xlu1 %v2464_v24 }
 0x79a   : > { %2468 = vmax.xlane.f32.xlu0 %v2467_v30 }
 0x79b   : > { %v5052_v4 = vpop.f32.mrb[44].mxu0 }
 0x79c   : > { %v5054_v46 = vpop.f32.mrb[45].mxu0  ;;  %v2479_v11 = vsel %vm1287_vm3, %v5052_v4, -inf }
 0x79d   : > { %v5056_v6 = vpop.f32.mrb[46].mxu0  ;;  %v2473_v29 = vsel %vm1287_vm3, %v5054_v46, -inf }
 0x79e   : > { %v5062_v10 = vpop.f32.mrb[47].mxu0  ;;  %2474 = vmax.xlane.f32.xlu1 %v2473_v29  ;;  %2471 = vmax.xlane.f32.xlu0 %v2470_v7  ;;  %v2482_v14 = vsel %vm1287_vm3, %v5056_v6, -inf }
 0x79f   : > { %v2476_v13 = vsel %vm1287_vm3, %v5062_v10, -inf }
 0x7a2   : > { %2480 = vmax.xlane.f32.xlu1 %v2479_v11  ;;  %2477 = vmax.xlane.f32.xlu0 %v2476_v13 }
 0x7a6   : > { %2483 = vmax.xlane.f32.xlu0 %v2482_v14 }
 0x7b3   : > { %2553 = vrot.lane.b32.xlu1 %v4788_v12, %s4250_s30 }
 0x7cd   : > { %v2126_v15 = vpop.xlane.xlu1 %2125 }
 0x7d1   : > { %v2120_v17 = vpop.xlane.xlu1 %2119  ;;  %v2129_v18 = vpop.xlane.xlu0 %2128 }
 0x7d2   : > { %3968 = vrcp.f32 %v2120_v17 }
 0x7d5   : > { %v2138_v21 = vpop.xlane.xlu1 %2137  ;;  %v2123_v26 = vpop.xlane.xlu0 %2122 }
 0x7d6   : > { %3970 = vrcp.f32 %v2123_v26 }
 0x7d7   : > { %3972 = vrcp.f32 %v2129_v18 }
 0x7d8   : > { %3974 = vrcp.f32 %v2126_v15 }
 0x7d9   : > { %v2141_v2 = vpop.xlane.xlu0 %2140  ;;  %v2132_v27 = vpop.xlane.xlu1 %2131 }
 0x7da   : > { %3976 = vrcp.f32 %v2132_v27 }
 0x7dc   : > { %v3969_v20 = vpop.eup %3968 }
 0x7dd   : > { %v2135_v31 = vpop.xlane.xlu0 %2134  ;;  %v2167_v5 = vpop.permute.xlu1 %2166  ;;  %v2150_v12 = vmul.f32 %v3969_v20, %v5000_v37  ;;  %v3876_v37 = vld [vmem:[%s4579_s3 + $0x20] sm:$0xff]  }
 0x7de   : > { %3978 = vrcp.f32 %v2135_v31 }
 0x7df   : > { %3980 = vrcp.f32 %v2141_v2 }
 0x7e0   : > { %v3971_v8 = vpop.eup %3970  ;;  %3982 = vrcp.f32 %v2138_v21 }
 0x7e1   : > { %v2165_v39 = vpop.permute.xlu0 %2164  ;;  %v2151_v32 = vmul.f32 %v3971_v8, %v5008_v42  ;;  %v3973_v33 = vpop.eup %3972 }
 0x7e2   : > { %3493 = vmatprep.subr.bf16.mxu1 %v2165_v39  ;;  %v3975_v41 = vpop.eup %3974  ;;  %v2169_v9 = vpop.permute.xlu1 %2168  ;;  %v2153_v45 = vmul.f32 %v3973_v33, %v5002_v40 }
 0x7e3   : > { %3494 = vmatpush3.bf16.msra.mxu1 %v2165_v39  ;;  %v2158_v28 = vpack.c.bf16 %v2151_v32, %v2150_v12  ;;  %v2152_v44 = vmul.f32 %v3975_v41, %v4996_v38 }
 0x7e4   : > { %3495 = vmatprep.subr.bf16.mxu1 %v2167_v5  ;;  %v3977_v34 = vpop.eup %3976 }
 0x7e5   : > { %3499 = vmatprep.mubr.msk.bf16.mxu1 %vm1287_vm3, %v2158_v28  ;;  %v2154_v48 = vmul.f32 %v3977_v34, %v5016_v51  ;;  %v2159_v54 = vpack.c.bf16 %v2153_v45, %v2152_v44 }
 0x7e7   : > { %3496 = vmatpush3.bf16.msra.mxu1 %v2167_v5 }
 0x7e8   : > { %v3979_v43 = vpop.eup %3978  ;;  %3497 = vmatprep.subr.bf16.mxu1 %v2169_v9 }
 0x7e9   : > { %v2155_v42 = vmul.f32 %v3979_v43, %v5024_v19  ;;  %v3981_v61 = vpop.eup %3980 }
 0x7ea   : > { %v3983_v36 = vpop.eup %3982  ;;  %v2157_v40 = vmul.f32 %v3981_v61, %v5018_v50 }
 0x7eb   : > { %3498 = vmatpush3.bf16.msra.mxu1 %v2169_v9  ;;  %v2160_v22 = vpack.c.bf16 %v2155_v42, %v2154_v48  ;;  %v2156_v19 = vmul.f32 %v3983_v36, %v5010_v49 }
 0x7ec   : > { %3507 = vmatprep.subr.bf16.mxu1 %v3876_v37 }
 0x7ed   : > { %v2161_v38 = vpack.c.bf16 %v2157_v40, %v2156_v19 }
 0x7ee   : > { %3500 = vmatmul.mubr.msk.bf16.vlgmr.msra.gmra.mrb[32].mxu1 %vm1287_vm3, %v2159_v54 }
 0x7ef   : > { %3503 = vmatprep.mubr.msk.bf16.mxu1 %vm1287_vm3, %v2160_v22  ;;  %3508 = vmatpush3.bf16.msra.mxu1 %v3876_v37 }
 0x7f0   : > { %3509 = vmatprep.subr.bf16.mxu1 %v3877_v59 }
 0x7f3   : > { %3510 = vmatpush3.bf16.msra.mxu1 %v3877_v59 }
 0x7f6   : > { %3504 = vmatmul.mubr.msk.bf16.gmra.mrb[36].mxu1 %vm1287_vm3, %v2161_v38 }
 0x823   : > { %v2463_v51 = vpop.xlane.xlu0 %2462 }
 0x824   : > { %v2485_v16 = vsub.f32 %v5040_v57, %v2463_v51 }
 0x825   : > { %v2466_v58 = vpop.xlane.xlu1 %2465 }
 0x826   : > { %v2493_v0 = vmul.f32 1.442695, %v2485_v16  ;;  %v2486_v1 = vsub.f32 %v5046_v23, %v2466_v58 }
 0x827   : > { %v2469_v55 = vpop.xlane.xlu0 %2468 }
 0x828   : > { %v2487_v62 = vsub.f32 %v5038_v47, %v2469_v55  ;;  %v2495_v24 = vmul.f32 1.442695, %v2486_v1 }
 0x82a   : > { %v2497_v25 = vmul.f32 1.442695, %v2487_v62 }
 0x82b   : > { %v2475_v3 = vpop.xlane.xlu1 %2474  ;;  %v2472_v50 = vpop.xlane.xlu0 %2471 }
 0x82c   : > { %3984 = vpow2.f32 %v2497_v25  ;;  %v2488_v49 = vsub.f32 %v5042_v56, %v2472_v50  ;;  %v2489_v35 = vsub.f32 %v5054_v46, %v2475_v3 }
 0x82d   : > { %3986 = vpow2.f32 %v2493_v0 }
 0x82e   : > { %v2499_v53 = vmul.f32 1.442695, %v2488_v49  ;;  %v2501_v47 = vmul.f32 1.442695, %v2489_v35  ;;  %v3878_v49 = vld [vmem:[%s4579_s3 + $0x30] sm:$0xff]  }
 0x82f   : > { %v2481_v30 = vpop.xlane.xlu1 %2480  ;;  %v2478_v57 = vpop.xlane.xlu0 %2477 }
 0x830   : > { %v2491_v29 = vsub.f32 %v5052_v4, %v2481_v30  ;;  %3988 = vpow2.f32 %v2499_v53  ;;  %v2490_v23 = vsub.f32 %v5062_v10, %v2478_v57  ;;  %v3879_v57 = vld [vmem:[%s4579_s3 + $0x38] sm:$0xff]  }
 0x831   : > { %3990 = vpow2.f32 %v2495_v24 }
 0x832   : > { %v2505_v7 = vmul.f32 1.442695, %v2491_v29  ;;  %v2503_v15 = vmul.f32 1.442695, %v2490_v23 }
 0x833   : > { %v2554_v11 = vpop.permute.xlu1 %2553  ;;  %v2484_v13 = vpop.xlane.xlu0 %2483 }
 0x834   : > { %3992 = vpow2.f32 %v2505_v7  ;;  %v2492_v56 = vsub.f32 %v5056_v6, %v2484_v13  ;;  %3535 = vmatprep.subr.bf16.mxu1 %v2554_v11 }
 0x835   : > { %3994 = vpow2.f32 %v2501_v47 }
 0x836   : > { %v5094_v14 = vpop.eup %3984  ;;  %v2507_v46 = vmul.f32 1.442695, %v2492_v56  ;;  %v3880_v56 = vld [vmem:[%s4581_s29] sm:$0xff]  }
 0x837   : > { %v2515_v4 = vsel %vm1287_vm3, %v5094_v14, 0.0  ;;  %v3987_v17 = vpop.eup %3986  ;;  %3563 = vmatprep.subr.bf16.mxu0 %v3880_v56 }
 0x838   : > { %3996 = vpow2.f32 %v2507_v46  ;;  %2516 = vadd.xlane.f32.xlu1 %v2515_v4  ;;  %v2509_v10 = vsel %vm1287_vm3, %v3987_v17, 0.0  ;;  %3564 = vmatpush3.bf16.msra.mxu0 %v3880_v56  ;;  %v3882_v46 = vld [vmem:[%s4581_s29 + $0x10] sm:$0xff]   ;;  %v3884_v4 = vld [vmem:[%s4581_s29 + $0x20] sm:$0xff]  }
 0x839   : > { %3998 = vpow2.f32 %v2503_v15  ;;  %v3883_v15 = vld [vmem:[%s4581_s29 + $0x18] sm:$0xff]  }
 0x83a   : > { %v5098_v18 = vpop.eup %3988 }
 0x83b   : > { %v2518_v6 = vsel %vm1287_vm3, %v5098_v18, 0.0  ;;  %v3991_v21 = vpop.eup %3990 }
 0x83c   : > { %2510 = vadd.xlane.f32.xlu1 %v2509_v10  ;;  %2519 = vadd.xlane.f32.xlu0 %v2518_v6  ;;  %v2512_v31 = vsel %vm1287_vm3, %v3991_v21, 0.0 }
 0x83e   : > { %v5103_v26 = vpop.eup %3992 }
 0x83f   : > { %v2527_v2 = vsel %vm1287_vm3, %v5103_v26, 0.0  ;;  %v5107_v27 = vpop.eup %3994 }
 0x840   : > { %2528 = vadd.xlane.f32.xlu1 %v2527_v2  ;;  %2513 = vadd.xlane.f32.xlu0 %v2512_v31  ;;  %v2521_v8 = vsel %vm1287_vm3, %v5107_v27, 0.0 }
 0x842   : > { %v5110_v20 = vpop.eup %3996 }
 0x843   : > { %v2530_v5 = vsel %vm1287_vm3, %v5110_v20, 0.0  ;;  %v3999_v39 = vpop.eup %3998 }
 0x844   : > { %2522 = vadd.xlane.f32.xlu1 %v2521_v8  ;;  %2531 = vadd.xlane.f32.xlu0 %v2530_v5  ;;  %v2524_v12 = vsel %vm1287_vm3, %v3999_v39, 0.0 }
 0x848   : > { %2525 = vadd.xlane.f32.xlu0 %v2524_v12  ;;  %v3886_v12 = vld [vmem:[%s4581_s29 + $0x30] sm:$0xff]  }
 0x855   : > { %2557 = vrot.lane.b32.xlu1 %v4794_v60, %s4250_s30 }
 0x859   : > { %2559 = vrot.lane.b32.xlu1 %v4800_v63, %s4250_s30 }
 0x85e   : > { %2555 = vrot.lane.b32.xlu0 %v4786_v52, %s4250_s30 }
 0x8c1   : > { %v3501_v32 = vpop.f32.mrb[32].mxu1 }
 0x8c2   : > { %v2220_v28 = vpop.f32.mrb[33].mxu1 }
 0x8c3   : > { %v3502_v33 = vpop.f32.mrb[34].mxu1 }
 0x8c4   : > { %v2252_v41 = vpack.c.bf16 %v3502_v33, %v3501_v32  ;;  %v2223_v34 = vpop.f32.mrb[35].mxu1  ;;  %v3887_v32 = vld [vmem:[%s4581_s29 + $0x38] sm:$0xff]  }
 0x8c5   : > { %v2517_v9 = vpop.xlane.xlu1 %2516  ;;  %v2251_v43 = vpack.c.bf16 %v2223_v34, %v2220_v28  ;;  %v3127_v28 = vld [vmem:[%s514_s24] ss:$0 sm:$0xff]  ;;  %s2902_s24 = sshll.u32 %s4583_s21, 4  ;;  %s5175_s24 = int_to_ptr.vmem [resolvable:$true] %s2902_s24 }
 0x8c6   : > { %v4016_v33 = vld [vmem:[%s4583_s21 + $0x18] sm:$0xff]  ;;  %s4112_s5 = scalar_lea.vmem %s5175_s24, 1024  ;;  %p4119_p3 = scmp.lt.s32.totalorder %s5175_s24, %s4117_s19 }
 0x8c7   : > { %3511 = vmatprep.mubr.msk.bf16.mxu1 %vm1197_vm2, %v2251_v43  ;;  %p4113_p0 = scmp.ne.s32.totalorder %s5175_s24, %s4112_s5  ;;  %p4120_p1 = scmp.lt.s32.totalorder %s4118_s15, %s4112_s5 }
 0x8c8   : > { %3512 = vmatmul.mubr.msk.bf16.vlgmr.msra.gmra.mrb[16].mxu1 %vm1197_vm2, %v2252_v41  ;;  %v1180_v41 = vadd.f32 %v4016_v33, %v3127_v28 }
 0x8c9   : > { %v2511_v45 = vpop.xlane.xlu1 %2510  ;;  %3536 = vmatpush3.bf16.msra.mxu1 %v2554_v11  ;;  %v2520_v60 = vpop.xlane.xlu0 %2519  ;;  %p4114_p10 = pnand %p4113_p0, %p5311_p12  ;;  %p4121_p8 = por %p4120_p1, %p4119_p3 }
 0x8ca   : > { %v3505_v37 = vpop.f32.mrb[36].mxu1  ;;  %4000 = vrcp.f32 %v2511_v45  ;;  %v4018_v45 = vld [vmem:[%s4583_s21 + $0x8] sm:$0xff] }
 0x8cb   : > { %v2236_v42 = vpop.f32.mrb[37].mxu1  ;;  %p4115_p2 = pneg %p4114_p10 }
 0x8cc   : > { %v3506_v63 = vpop.f32.mrb[38].mxu1 }
 0x8cd   : > { %v2254_v44 = vpack.c.bf16 %v3506_v63, %v3505_v37  ;;  %v2239_v52 = vpop.f32.mrb[39].mxu1  ;;  %v2529_v48 = vpop.xlane.xlu1 %2528  ;;  %v4019_v37 = vld [vmem:[%s4583_s21 + $0x10] sm:$0xff]  ;;  %p4122_p13 = pnand %p4121_p8, %p4115_p2 }
 0x8ce   : > { %v2253_v54 = vpack.c.bf16 %v2239_v52, %v2236_v42  ;;  %v2514_v59 = vpop.xlane.xlu0 %2513  ;;  %v1179_v42 = vadd.f32 %v4019_v37, %v3127_v28 }
 0x8cf   : > { %4002 = vrcp.f32 %v2514_v59 }
 0x8d0   : > { %3515 = vmatprep.mubr.msk.bf16.mxu1 %vm1197_vm2, %v2253_v54  ;;  %4004 = vrcp.f32 %v2520_v60  ;;  %v1178_v60 = vadd.f32 %v4018_v45, %v3127_v28 }
 0x8d1   : > { %3516 = vmatmul.mubr.msk.bf16.gmra.mrb[20].mxu1 %vm1197_vm2, %v2254_v44  ;;  %v2523_v22 = vpop.xlane.xlu1 %2522  ;;  %4006 = vrcp.f32 %v2517_v9  ;;  %v4017_v9 = vld [vmem:[%s4583_s21] sm:$0xff] }
 0x8d2   : > { %v2532_v61 = vpop.xlane.xlu0 %2531  ;;  %4008 = vrcp.f32 %v2523_v22  ;;  %v1177_v43 = vadd.f32 %v4017_v9, %v3127_v28 }
 0x8d4   : > { %v4001_v40 = vpop.eup %4000 }
 0x8d5   : > { %v2558_v38 = vpop.permute.xlu1 %2557  ;;  %v2541_v16 = vmul.f32 %v4001_v40, %v3987_v17  ;;  %v3885_v17 = vld [vmem:[%s4581_s29 + $0x28] sm:$0xff]   ;;  %v4020_v40 = vld [vmem:[%s4583_s21 + $0x38] sm:$0xff] }
 0x8d6   : > { %v2526_v36 = vpop.xlane.xlu0 %2525 }
 0x8d7   : > { %4010 = vrcp.f32 %v2526_v36 }
 0x8d8   : > { %4012 = vrcp.f32 %v2532_v61 }
 0x8d9   : > { %v4003_v19 = vpop.eup %4002  ;;  %4014 = vrcp.f32 %v2529_v48  ;;  %v2560_v1 = vpop.permute.xlu1 %2559 }
 0x8da   : > { %v2556_v51 = vpop.permute.xlu0 %2555  ;;  %v2542_v58 = vmul.f32 %v4003_v19, %v3991_v21  ;;  %v4005_v62 = vpop.eup %4004  ;;  %v1184_v19 = vadd.f32 %v4020_v40, %v3127_v28 }
 0x8db   : > { %3537 = vmatprep.subr.bf16.mxu1 %v2556_v51  ;;  %v4007_v0 = vpop.eup %4006  ;;  %v2544_v50 = vmul.f32 %v4005_v62, %v5098_v18  ;;  %v4023_v62 = vld [vmem:[%s4583_s21 + $0x30] sm:$0xff] }
 0x8dc   : > { %3538 = vmatpush3.bf16.msra.mxu1 %v2556_v51  ;;  %v2549_v55 = vpack.c.bf16 %v2542_v58, %v2541_v16  ;;  %v4009_v25 = vpop.eup %4008  ;;  %v2543_v53 = vmul.f32 %v4007_v0, %v5094_v14  ;;  %v3881_v14 = vld [vmem:[%s4581_s29 + $0x8] sm:$0xff]   ;;  %v4021_v51 = vld [vmem:[%s4583_s21 + $0x20] sm:$0xff]  ;;  %v1183_v0 = vadd.f32 %v4023_v62, %v3127_v28  ;;  %s5182_s29 = scalar_lea.sflag [#allocation4], %s5310_s20 }
 0x8dd   : > { %3539 = vmatprep.subr.bf16.mxu1 %v2558_v38  ;;  %v2545_v24 = vmul.f32 %v4009_v25, %v5107_v27  ;;  %3565 = vmatprep.subr.bf16.mxu0 %v3881_v14  ;;  %v1181_v16 = vadd.f32 %v4021_v51, %v3127_v28  ;;  %v4022_v58 = vld [vmem:[%s4583_s21 + $0x28] sm:$0xff] }
 0x8de   : > { %3543 = vmatprep.mubr.msk.bf16.mxu1 %vm1287_vm3, %v2549_v55  ;;  %v2550_v30 = vpack.c.bf16 %v2544_v50, %v2543_v53  ;;  %3566 = vmatpush3.bf16.msra.mxu0 %v3881_v14  ;;  %v1182_v55 = vadd.f32 %v4022_v58, %v3127_v28 }
 0x8df   : > { %3567 = vmatprep.subr.bf16.mxu0 %v3882_v46 }
 0x8e0   : > { %3540 = vmatpush3.bf16.msra.mxu1 %v2558_v38 }
 0x8e1   : > { %v4011_v3 = vpop.eup %4010  ;;  %3541 = vmatprep.subr.bf16.mxu1 %v2560_v1 }
 0x8e2   : > { %v2546_v35 = vmul.f32 %v4011_v3, %v3999_v39  ;;  %v4013_v29 = vpop.eup %4012  ;;  %3568 = vmatpush3.bf16.msra.mxu0 %v3882_v46 }
 0x8e3   : > { %v4015_v7 = vpop.eup %4014  ;;  %v2548_v23 = vmul.f32 %v4013_v29, %v5110_v20  ;;  %3569 = vmatprep.subr.bf16.mxu0 %v3883_v15 }
 0x8e4   : > { %3542 = vmatpush3.bf16.msra.mxu1 %v2560_v1  ;;  %v2551_v47 = vpack.c.bf16 %v2546_v35, %v2545_v24  ;;  %v2547_v11 = vmul.f32 %v4015_v7, %v5103_v26 }
 0x8e5   : > { %3551 = vmatprep.subr.bf16.mxu1 %v3878_v49 }
 0x8e6   : > { %v2552_v13 = vpack.c.bf16 %v2548_v23, %v2547_v11  ;;  %3570 = vmatpush3.bf16.msra.mxu0 %v3883_v15 }
 0x8e7   : > { %3544 = vmatmul.mubr.msk.bf16.vlgmr.msra.gmra.mrb[40].mxu1 %vm1287_vm3, %v2550_v30  ;;  %3571 = vmatprep.subr.bf16.mxu0 %v3884_v4 }
 0x8e8   : > { %3547 = vmatprep.mubr.msk.bf16.mxu1 %vm1287_vm3, %v2551_v47  ;;  %3552 = vmatpush3.bf16.msra.mxu1 %v3878_v49 }
 0x8e9   : > { %3553 = vmatprep.subr.bf16.mxu1 %v3879_v57 }
 0x8ea   : > { %3572 = vmatpush3.bf16.msra.mxu0 %v3884_v4 }
 0x8eb   : > { %3573 = vmatprep.subr.bf16.mxu0 %v3885_v17 }
 0x8ec   : > { %3554 = vmatpush3.bf16.msra.mxu1 %v3879_v57 }
 0x8ed   : > { %3603 = vmatprep.subr.bf16.mxu1 %v3880_v56 }
 0x8ee   : > { %3574 = vmatpush3.bf16.msra.mxu0 %v3885_v17 }
 0x8ef   : > { %3548 = vmatmul.mubr.msk.bf16.gmra.mrb[44].mxu1 %vm1287_vm3, %v2552_v13  ;;  %3575 = vmatprep.subr.bf16.mxu0 %v3886_v12 }
 0x8f2   : > { %3576 = vmatpush3.bf16.msra.mxu0 %v3886_v12 }
 0x8f3   : > { %3577 = vmatprep.subr.bf16.mxu0 %v3887_v32 }
 0x8f6   : > { %3578 = vmatpush3.bf16.msra.mxu0 %v3887_v32 }
 0x9ba   : > { %v3545_v18 = vpop.f32.mrb[40].mxu1 }
 0x9bb   : > { %v2611_v10 = vpop.f32.mrb[41].mxu1 }
 0x9bc   : > { %v3546_v6 = vpop.f32.mrb[42].mxu1 }
 0x9bd   : > { %v2643_v21 = vpack.c.bf16 %v3546_v6, %v3545_v18  ;;  %v2614_v26 = vpop.f32.mrb[43].mxu1 }
 0x9be   : > { %v2642_v2 = vpack.c.bf16 %v2614_v26, %v2611_v10 }
 0x9c0   : > { %3555 = vmatprep.mubr.msk.bf16.mxu1 %vm1197_vm2, %v2642_v2 }
 0x9c1   : > { %3556 = vmatmul.mubr.msk.bf16.vlgmr.msra.gmra.mrb[16].mxu1 %vm1197_vm2, %v2643_v21 }
 0x9c2   : > { %v3549_v27 = vpop.f32.mrb[44].mxu1  ;;  %3611 = vmatpush3.bf16.msra.mxu1 %v3880_v56 }
 0x9c3   : > { %v2627_v31 = vpop.f32.mrb[45].mxu1  ;;  %3604 = vmatprep.subr.bf16.mxu1 %v3881_v14 }
 0x9c4   : > { %v3550_v20 = vpop.f32.mrb[46].mxu1 }
 0x9c5   : > { %v2645_v8 = vpack.c.bf16 %v3550_v20, %v3549_v27  ;;  %v2630_v5 = vpop.f32.mrb[47].mxu1 }
 0x9c6   : > { %v2644_v39 = vpack.c.bf16 %v2630_v5, %v2627_v31  ;;  %3612 = vmatpush3.bf16.msra.mxu1 %v3881_v14 }
 0x9c7   : > { %3605 = vmatprep.subr.bf16.mxu1 %v3882_v46 }
 0x9c8   : > { %3559 = vmatprep.mubr.msk.bf16.mxu1 %vm1197_vm2, %v2644_v39 }
 0x9c9   : > { %3560 = vmatmul.mubr.msk.bf16.gmra.mrb[20].mxu1 %vm1197_vm2, %v2645_v8 }
 0x9ca   : > { %3613 = vmatpush3.bf16.msra.mxu1 %v3882_v46 }
 0x9cb   : > { %3606 = vmatprep.subr.bf16.mxu1 %v3883_v15 }
 0x9ce   : > { %3614 = vmatpush3.bf16.msra.mxu1 %v3883_v15 }
 0x9cf   : > { %3607 = vmatprep.subr.bf16.mxu1 %v3884_v4 }
 0x9d2   : > { %3615 = vmatpush3.bf16.msra.mxu1 %v3884_v4 }
 0x9d3   : > { %3608 = vmatprep.subr.bf16.mxu1 %v3885_v17 }
 0x9d6   : > { %3616 = vmatpush3.bf16.msra.mxu1 %v3885_v17 }
 0x9d7   : > { %3609 = vmatprep.subr.bf16.mxu1 %v3886_v12 }
 0x9da   : > { %3617 = vmatpush3.bf16.msra.mxu1 %v3886_v12 }
 0x9db   : > { %3610 = vmatprep.subr.bf16.mxu1 %v3887_v32 }
 0x9de   : > { %3618 = vmatpush3.bf16.msra.mxu1 %v3887_v32 }
 0xa94   : > { %v3557_v34 = vpop.f32.mrb[16].mxu1 }
 0xa95   : > { %v2708_v63 = vpop.f32.mrb[17].mxu1  ;;  %v3619_v61 = vadd.f32 %v3557_v34, %v1179_v42 }
 0xa96   : > { %v3558_v44 = vpop.f32.mrb[18].mxu1  ;;  %v3620_v54 = vadd.f32 %v2708_v63, %v1177_v43 }
 0xa97   : > { %v3621_v52 = vadd.f32 %v3558_v44, %v1180_v41  ;;  %v2711_v48 = vpop.f32.mrb[19].mxu1 }
 0xa98   : > { %v3622_v59 = vadd.f32 %v2711_v48, %v1178_v60 }
 0xa99   : > { %v2748_v36 = vpack.c.bf16 %v3621_v52, %v3619_v61 }
 0xa9a   : > { %v2747_v22 = vpack.c.bf16 %v3622_v59, %v3620_v54 }
 0xa9c   : > { %v3561_v38 = vpop.f32.mrb[20].mxu1  ;;  %3579 = vmatprep.mubr.bf16.mxu0 %v2747_v22 }
 0xa9d   : > { %v2724_v25 = vpop.f32.mrb[21].mxu1  ;;  %3580 = vmatmul.mubr.bf16.vlgmr.msra.gmra.mrb[48].mxu0 %v2748_v36  ;;  %v3623_v53 = vadd.f32 %v3561_v38, %v1183_v0 }
 0xa9e   : > { %v3562_v1 = vpop.f32.mrb[22].mxu1  ;;  %v3624_v49 = vadd.f32 %v2724_v25, %v1181_v16 }
 0xa9f   : > { %v3625_v3 = vadd.f32 %v3562_v1, %v1184_v19  ;;  %v2727_v50 = vpop.f32.mrb[23].mxu1 }
 0xaa0   : > { %v3626_v35 = vadd.f32 %v2727_v50, %v1182_v55 }
 0xaa1   : > { %v2750_v30 = vpack.c.bf16 %v3625_v3, %v3623_v53 }
 0xaa2   : > { %v2749_v24 = vpack.c.bf16 %v3626_v35, %v3624_v49 }
 0xaa4   : > { %3583 = vmatprep.mubr.bf16.mxu1 %v2749_v24 }
 0xaa5   : > { %3584 = vmatmul.mubr.bf16.vlgmr.msra.gmra.mrb[48].mxu1 %v2750_v30 }
 0xb70   : > { %v3581_v57 = vpop.f32.mrb[48].mxu0 }
 0xb71   : > { %v2858_v29 = vadd.f32 %v3619_v61, %v3581_v57  ;;  %v2849_v47 = vpop.f32.mrb[49].mxu0 }
 0xb72   : > { %v2850_v7 = vadd.f32 %v3620_v54, %v2849_v47  ;;  %v3582_v23 = vpop.f32.mrb[50].mxu0 }
 0xb73   : > { %2882 = vst [vmem:[%s4583_s21 + $0x10] sm:$0xff] %v2858_v29  ;;  %v2861_v11 = vadd.f32 %v3621_v52, %v3582_v23  ;;  %v2852_v13 = vpop.f32.mrb[51].mxu0 }
 0xb74   : > { %2880 = vst [vmem:[%s4583_s21] sm:$0xff] %v2850_v7  ;;  %v2853_v56 = vadd.f32 %v3622_v59, %v2852_v13 }
 0xb75   : > { %2883 = vst [vmem:[%s4583_s21 + $0x18] sm:$0xff] %v2861_v11 }
 0xb76   : > { %2881 = vst [vmem:[%s4583_s21 + $0x8] sm:$0xff] %v2853_v56 }
 0xb78   : > { %v3585_v14 = vpop.f32.mrb[48].mxu1 }
 0xb79   : > { %v2874_v46 = vadd.f32 %v3623_v53, %v3585_v14  ;;  %v2865_v15 = vpop.f32.mrb[49].mxu1 }
 0xb7a   : > { %v2866_v4 = vadd.f32 %v3624_v49, %v2865_v15  ;;  %v3586_v17 = vpop.f32.mrb[50].mxu1 }
 0xb7b   : > { %2886 = vst [vmem:[%s4583_s21 + $0x30] sm:$0xff] %v2874_v46  ;;  %v2877_v18 = vadd.f32 %v3625_v3, %v3586_v17  ;;  %v2868_v10 = vpop.f32.mrb[51].mxu1 }
 0xb7c   : > { %2884 = vst [vmem:[%s4583_s21 + $0x20] sm:$0xff] %v2866_v4  ;;  %v2869_v6 = vadd.f32 %v3626_v35, %v2868_v10 }
 0xb7d   : > { %2887 = vst [vmem:[%s4583_s21 + $0x38] sm:$0xff] %v2877_v18 }
 0xb7e   : > { %2885 = vst [vmem:[%s4583_s21 + $0x28] sm:$0xff] %v2869_v6 }
 0xb7f   : > { %4125 = shalt.err (!%p4122_p13)
}
 0xb80   : > { %s4126_s21 = scalar_lea.hbm %s5173_s27, 1024  ;;  %s4130_s2 = scalar_lea.hbm %s5309_s10, 2048 }
 0xb81   : > { %p4127_p5 = scmp.ne.s32.totalorder %s5173_s27, %s4126_s21  ;;  %p4131_p7 = scmp.lt.u32.totalorder %s5173_s27, %s5309_s10 }
 0xb82   : > { %p4132_p11 = scmp.lt.u32.totalorder %s4130_s2, %s4126_s21  ;;  %p4134_p0 = scmp.lt.u32.totalorder %s4126_s21, %s5173_s27 }
 0xb83   : > { %p4128_p6 = pnand %p4127_p5, %p5311_p12 }
 0xb84   : > { %p4133_p4 = por %p4132_p11, %p4131_p7 }
 0xb85   : > { %p4129_p9 = pneg %p4128_p6 }
 0xb86   : > { %p4135_p10 = por %p4134_p0, %p4133_p4 }
 0xb88   : > { %p4136_p2 = pnand %p4135_p10, %p4129_p9 }
 0xb8a   : > { %4139 = shalt.err (!%p4136_p2)
}
 0xb8b   : > { %s4252_s26 = smov 128   ;;  %s4253_s30 = smov 8  }
 0xb8c   : > { %3680 = dma.vmem_to_hbm [thread:$0]  (%p5311_p12), %s5175_s24, 1024, %s5173_s27, %s5182_s29, %s4252_s26, %s4252_s26, %s4253_s30  }
 0xb8d PF: > { %s5312_s3 = sld [smem:[#allocation17_spill]]  ;;  %s5313_s23 = sld [smem:[#allocation12_spill]] }
 0xb8e   : > { %s5314_s22 = sld [smem:[#allocation22_spill]] }
 0xb93   : > { %p3700_p3 = scmp.ge.s32.totalorder %s5312_s3, 2  ;;  %s2917_s4 = sand.u32 1, %s5313_s23  }
 0xb94   : > { %p5315_p1 = scmp.ne.s32.totalorder %s5314_s22, 0  ;;  %s2918_s16 = scalar_lea.sflag [#allocation4], %s2917_s4 }
 0xb96   : > { %p3694_p8 = pnand %p3700_p3, %p5315_p1 }
 0xb98   : > { %4193 = dma.done.wait (!%p3694_p8), %s2918_s16, 1024  }
 0xb99   : > { %4195 = vsyncadd (!%p3694_p8), %s2918_s16, 4294966272  ;;  %s27_s23 = sadd.s32 1, %s5312_s3   ;;  %s5316_s20 = sld [smem:[#allocation13_spill]] }
 0xb9a   : > { %p24_p13 = scmp.ge.s32.totalorder %s27_s23, 6   ;;  %s5317_s15 = sld [smem:[#allocation21_spill]] }
 0xb9b   : > { %s5318_s25 = sld [smem:[#allocation14_spill]]  ;;  %s5319_s18 = sld [smem:[#allocation20_spill]] }
 0xb9c   : > { %s5320_s19 = sld [smem:[#allocation15_spill]]  ;;  %s5321_s24 = sld [smem:[#allocation16_spill]] }
 0xb9d   : > { %s5322_s21 = sld [smem:[#allocation18_spill]]  ;;  %s5323_s22 = sld [smem:[#allocation19_spill]] }
 0xb9e   : > { %s5324_s13 = smov %s4202_s14  ;;  %s5326_s16 = smov %s4214_s17 }
 0xb9f   : > { %s5325_s14 = smov %s5316_s20  ;;  %26 = sbr.rel (!%p24_p13) target bundleno = 16 (0x10), region = 137 }
 0xba1   : > { %s5327_s17 = smov %s5318_s25 }
 0xba2   : > { %s5328_s20 = smov %s5321_s24 }
 0xba6   :  { %2923 = vsyncpa [#allocation3], 1 }
 0xba7   :  { %2925 = vsyncpa [#allocation3 + $0x1], 1 }
 0xba8   :  { %2926 = vsyncpa [#allocation6], 1 }
 0xba9   :  { %2928 = vsyncpa [#allocation6 + $0x1], 1 }
 0xbaa   :  { %2929 = vsyncpa [#allocation4], 1 }
 0xbab   :  { %2931 = vsyncpa [#allocation4 + $0x1], 1 }

</bundles_post_ra>
